<compile_context>
chip_gen: v5e
topology: v5e:2x2
jax: 0.10.0
libtpu: 0.0.40
codegen_flags: <defaults>
</compile_context>

<pallas_src>
import math
import functools

import jax
import jax.numpy as jnp
from jax.experimental import pallas as pl
from jax.experimental.pallas import tpu as pltpu


# ----------------------------- math helpers -----------------------------

def _layernorm(x, g, b, eps=1e-5):
    mu = jnp.mean(x, axis=-1, keepdims=True)
    var = jnp.mean((x - mu) ** 2, axis=-1, keepdims=True)
    return (x - mu) * jax.lax.rsqrt(var + eps) * g + b


def _gelu_exact(x):
    # matches torch.nn.GELU() default (erf-based, exact)
    return 0.5 * x * (1.0 + jax.lax.erf(x * (1.0 / math.sqrt(2.0))))


# ----------------------------- Pallas kernel -----------------------------

def transformer_stack_kernel(x_ref, wqkv_ref, wo_ref, w1_ref, w2_ref,
                             lnp_ref, b1_ref, fin_g_ref, fin_b_ref, o_ref,
                             *, heads, dim_head):
    """Grid = (B // B_TILE, depth). One grid step = one transformer layer applied to
    a group of B_TILE batch rows.

    The residual stream for the current batch group stays resident in the output
    block `o_ref` (VMEM, f32) across the depth axis; only bf16 layer weights are
    streamed from HBM each step.  The small f32 per-layer params (lnp, b1) are
    resident for the whole call and indexed by the layer id.
    """
    layer = pl.program_id(1)
    last = pl.num_programs(1) - 1
    BT, S, D = o_ref.shape
    inner = heads * dim_head

    # Load the embedded tokens into the resident residual stream at layer 0.
    @pl.when(layer == 0)
    def _():
        o_ref[...] = x_ref[...]

    x = o_ref[...].reshape(BT * S, D)        # (BT*S, D) f32 residual stream

    lp = lnp_ref[layer]                      # (5, D): ln1_g, ln1_b, ln2_g, ln2_b, b2
    b1 = b1_ref[layer]                       # (1, ff)

    # --- attention sublayer (pre-norm + residual), fused QKV, batched heads ---
    h = _layernorm(x, lp[0:1], lp[1:2]).astype(jnp.bfloat16)
    qkv = jnp.dot(h, wqkv_ref[0], preferred_element_type=jnp.float32)   # (BT*S, 3*inner)

    def split_heads(t):
        # (BT*S, inner) -> (BT*heads, S, dim_head): canonical leading-batch layout
        # for batched MXU matmuls (single relayout per tensor).
        return (t.reshape(BT, S, heads, dim_head)
                 .transpose(0, 2, 1, 3)
                 .reshape(BT * heads, S, dim_head))

    # wq was pre-scaled by dim_head**-0.5 at init time, so no activation scaling here.
    q = split_heads(qkv[:, 0 * inner:1 * inner]).astype(jnp.bfloat16)
    k = split_heads(qkv[:, 1 * inner:2 * inner]).astype(jnp.bfloat16)
    v = split_heads(qkv[:, 2 * inner:3 * inner]).astype(jnp.bfloat16)

    scores = jnp.einsum('gqd,gkd->gqk', q, k,
                        preferred_element_type=jnp.float32)             # (BT*H, S, S)
    scores = scores - jnp.max(scores, axis=-1, keepdims=True)
    p = jnp.exp(scores)
    # EUP reciprocal instead of a VALU divide.
    p = p * pl.reciprocal(jnp.sum(p, axis=-1, keepdims=True), approx=True)

    attn = jnp.einsum('gqk,gkd->gqd', p.astype(jnp.bfloat16), v,
                      preferred_element_type=jnp.float32)               # (BT*H, S, dh)
    attn = (attn.reshape(BT, heads, S, dim_head)
                .transpose(0, 2, 1, 3)
                .reshape(BT * S, inner))
    attn = jnp.dot(attn.astype(jnp.bfloat16), wo_ref[0],
                   preferred_element_type=jnp.float32)                  # (BT*S, D)
    x = x + attn

    # --- feed-forward sublayer (pre-norm + residual), exact GELU in f32 ---
    h2 = _layernorm(x, lp[2:3], lp[3:4]).astype(jnp.bfloat16)
    f = jnp.dot(h2, w1_ref[0], preferred_element_type=jnp.float32) + b1
    f = _gelu_exact(f)
    f = jnp.dot(f.astype(jnp.bfloat16), w2_ref[0],
                preferred_element_type=jnp.float32) + lp[4:5]
    x = x + f

    # Residual carried in the resident output block; final LayerNorm fused into the
    # last depth step.  The block is written back to HBM once per batch group.
    @pl.when(layer != last)
    def _():
        o_ref[...] = x.reshape(BT, S, D)

    @pl.when(layer == last)
    def _():
        o_ref[...] = _layernorm(x, fin_g_ref[...], fin_b_ref[...]).reshape(BT, S, D)


# ----------------------------- pallas_call wrapper -----------------------------

def run_transformer_stack(x, params, *, heads, dim_head, b_tile_max=4,
                          vmem_limit_bytes=48 * 1024 * 1024):
    """x: f32 [B, S, D] embedded tokens -> f32 [B, S, D] encoder output.

    Tuning notes:
      * v7x (64 MiB VMEM): keep b_tile_max ~4 and vmem_limit <= ~50 MiB; make sure
        B // b_tile >= 2 so both TensorCores get work on the "parallel" axis.
      * v6e / v5e (128 MiB VMEM): b_tile_max ~8 and vmem_limit ~64-96 MiB balances
        per-layer weight DMA against compute.
    """
    B, S, D = x.shape
    depth = params['wqkv'].shape[0]
    inner = heads * dim_head
    ff = params['w1'].shape[-1]

    # Largest divisor of B that is <= b_tile_max: one weight fetch serves b_tile rows.
    b_tile = 1
    for c in range(1, min(B, b_tile_max) + 1):
        if B % c == 0:
            b_tile = c

    kernel = functools.partial(transformer_stack_kernel, heads=heads, dim_head=dim_head)

    in_specs = [
        # Embedded activations for the current batch group (fetched once per group).
        pl.BlockSpec((b_tile, S, D), lambda b, l: (b, 0, 0)),
        # Large bf16 matmul weights, streamed (double-buffered) along the depth axis.
        pl.BlockSpec((1, D, 3 * inner), lambda b, l: (l, 0, 0)),   # wqkv
        pl.BlockSpec((1, inner, D), lambda b, l: (l, 0, 0)),       # wo
        pl.BlockSpec((1, D, ff), lambda b, l: (l, 0, 0)),          # w1
        pl.BlockSpec((1, ff, D), lambda b, l: (l, 0, 0)),          # w2
        # Tiny f32 per-layer params, consolidated + resident for the whole call.
        pl.BlockSpec((depth, 5, D), lambda b, l: (0, 0, 0)),       # lnp
        pl.BlockSpec((depth, 1, ff), lambda b, l: (0, 0, 0)),      # b1
        pl.BlockSpec((1, D), lambda b, l: (0, 0)),                 # final_g
        pl.BlockSpec((1, D), lambda b, l: (0, 0)),                 # final_b
    ]

    return pl.pallas_call(
        kernel,
        out_shape=jax.ShapeDtypeStruct((B, S, D), jnp.float32),
        grid_spec=pltpu.PrefetchScalarGridSpec(
            num_scalar_prefetch=0,
            grid=(B // b_tile, depth),              # depth innermost: weights pipelined,
                                                    # residual resident across it
            in_specs=in_specs,
            out_specs=pl.BlockSpec((b_tile, S, D), lambda b, l: (b, 0, 0)),
        ),
        compiler_params=pltpu.CompilerParams(
            dimension_semantics=("parallel", "arbitrary"),
            vmem_limit_bytes=vmem_limit_bytes),
    )(x, params['wqkv'], params['wo'], params['w1'], params['w2'],
      params['lnp'], params['b1'], params['final_g'], params['final_b'])


# ----------------------------- params + forward -----------------------------

def init_params(key, *, vocab_size, max_seq_len, dim, depth, heads, dim_head, ff_mult=4):
    inner = heads * dim_head
    ff = dim * ff_mult
    scale = dim_head ** -0.5

    def nrm(k, shape, std=0.02):
        return jax.random.normal(k, shape, jnp.float32) * std

    keys = iter(jax.random.split(key, 2 + depth * 6))
    tok_emb = nrm(next(keys), (vocab_size, dim))
    pos_emb = nrm(next(keys), (max_seq_len, dim))

    wqkv, wo, w1, w2 = [], [], [], []
    for _ in range(depth):
        wq = nrm(next(keys), (dim, inner)) * scale   # attention scale folded into wq
        wk = nrm(next(keys), (dim, inner))
        wv = nrm(next(keys), (dim, inner))
        wqkv.append(jnp.concatenate([wq, wk, wv], axis=1))   # (D, 3*inner) fused QKV
        wo.append(nrm(next(keys), (inner, dim)))
        w1.append(nrm(next(keys), (dim, ff)))
        w2.append(nrm(next(keys), (ff, dim)))

    # Consolidated D-sized per-layer params: rows = [ln1_g, ln1_b, ln2_g, ln2_b, b2].
    lnp = jnp.stack([jnp.ones((depth, dim), jnp.float32),
                     jnp.zeros((depth, dim), jnp.float32),
                     jnp.ones((depth, dim), jnp.float32),
                     jnp.zeros((depth, dim), jnp.float32),
                     jnp.zeros((depth, dim), jnp.float32)], axis=1)   # (depth, 5, D)

    return {
        'tok_emb': tok_emb,
        'pos_emb': pos_emb,
        # Matmul weights stored in bf16 (f32 accumulation happens in-kernel).
        'wqkv': jnp.stack(wqkv).astype(jnp.bfloat16),     # (depth, D, 3*inner)
        'wo':   jnp.stack(wo).astype(jnp.bfloat16),       # (depth, inner, D)
        'w1':   jnp.stack(w1).astype(jnp.bfloat16),       # (depth, D, ff)
        'w2':   jnp.stack(w2).astype(jnp.bfloat16),       # (depth, ff, D)
        # Consolidated small f32 params (resident in VMEM inside the kernel).
        'lnp': lnp,                                       # (depth, 5, D)
        'b1':  jnp.zeros((depth, 1, ff), jnp.float32),    # (depth, 1, ff)
        'final_g': jnp.ones((1, dim), jnp.float32),
        'final_b': jnp.zeros((1, dim), jnp.float32),
    }


def layout_embedder_forward(tokens, params, *, heads, dim_head, b_tile_max=4):
    """tokens: int32 [B, S] -> embeddings float32 [B, S, D]."""
    S = tokens.shape[1]
    dim = params['tok_emb'].shape[1]
    # Embedding gather + scaled absolute positional embedding (glue, plain JAX).
    x = (params['tok_emb'][tokens] + params['pos_emb'][:S] * (dim ** -0.5)).astype(jnp.float32)
    # emb_dropout = 0.0 -> identity.
    return run_transformer_stack(x, params, heads=heads, dim_head=dim_head,
                                 b_tile_max=b_tile_max)


# ----------------------------- pure-JAX reference (for validation) -----------------------------

def reference_forward(tokens, params, *, heads, dim_head):
    S = tokens.shape[1]
    dim = params['tok_emb'].shape[1]
    inner = heads * dim_head
    x = params['tok_emb'][tokens] + params['pos_emb'][:S] * (dim ** -0.5)
    depth = params['wqkv'].shape[0]
    for l in range(depth):
        lp = params['lnp'][l]
        h = _layernorm(x, lp[0:1], lp[1:2])
        qkv = h @ params['wqkv'][l].astype(jnp.float32)
        q, k, v = qkv[..., :inner], qkv[..., inner:2 * inner], qkv[..., 2 * inner:]
        B_, S_, _ = q.shape
        q = q.reshape(B_, S_, heads, dim_head)
        k = k.reshape(B_, S_, heads, dim_head)
        v = v.reshape(B_, S_, heads, dim_head)
        scores = jnp.einsum('bqhd,bkhd->bhqk', q, k)
        p = jax.nn.softmax(scores, axis=-1)
        attn = jnp.einsum('bhqk,bkhd->bqhd', p, v).reshape(B_, S_, inner)
        x = x + attn @ params['wo'][l].astype(jnp.float32)
        h2 = _layernorm(x, lp[2:3], lp[3:4])
        f = h2 @ params['w1'][l].astype(jnp.float32) + params['b1'][l]
        f = _gelu_exact(f)
        x = x + f @ params['w2'][l].astype(jnp.float32) + lp[4:5]
    return _layernorm(x, params['final_g'], params['final_b'])


# ----------------------------- demo -----------------------------

if __name__ == "__main__":
    # Small shapes consistent with the module (scaled down from
    # n_embed=768, n_layer=16, vocab=8192, max_seq_len=92, heads=8, dim_head=64).
    B, S = 2, 8
    VOCAB, MAX_SEQ, DIM, DEPTH, HEADS, DIM_HEAD = 64, 16, 32, 2, 2, 16

    key = jax.random.PRNGKey(0)
    pkey, tkey = jax.random.split(key)
    params = init_params(pkey, vocab_size=VOCAB, max_seq_len=MAX_SEQ, dim=DIM,
                         depth=DEPTH, heads=HEADS, dim_head=DIM_HEAD)
    tokens = jax.random.randint(tkey, (B, S), 0, VOCAB, dtype=jnp.int32)

    fwd = jax.jit(functools.partial(layout_embedder_forward, heads=HEADS, dim_head=DIM_HEAD))
    z = jax.block_until_ready(fwd(tokens, params))
    assert z.shape == (B, S, DIM) and z.dtype == jnp.float32

    # Validate against the f32 reference (differences come only from in-kernel bf16
    # activation casts and the EUP approximate reciprocal).
    z_ref = reference_forward(tokens, params, heads=HEADS, dim_head=DIM_HEAD)
    err = float(jnp.max(jnp.abs(z - z_ref)))
    assert err < 0.1, f"kernel/reference mismatch: max abs diff = {err}"

    print("KERNEL_OK")
</pallas_src>

<mosaic_0001>
module attributes {stable_mosaic.version = 11 : i64} {
  func.func @transformer_stack_kernel(%arg0: i32, %arg1: i32, %arg2: memref<2x8x32xf32, #tpu.memory_space<vmem>>, %arg3: memref<1x32x96xbf16, #tpu.memory_space<vmem>>, %arg4: memref<1x32x32xbf16, #tpu.memory_space<vmem>>, %arg5: memref<1x32x128xbf16, #tpu.memory_space<vmem>>, %arg6: memref<1x128x32xbf16, #tpu.memory_space<vmem>>, %arg7: memref<2x5x32xf32, #tpu.memory_space<vmem>>, %arg8: memref<2x1x128xf32, #tpu.memory_space<vmem>>, %arg9: memref<1x32xf32, #tpu.memory_space<vmem>>, %arg10: memref<1x32xf32, #tpu.memory_space<vmem>>, %arg11: memref<2x8x32xf32, #tpu.memory_space<vmem>>) attributes {dimension_semantics = [#tpu.dimension_semantics<parallel>, #tpu.dimension_semantics<arbitrary>], iteration_bounds = array<i64: 1, 2>, scalar_prefetch = 0 : i64, scratch_operands = 0 : i64, tpu.core_type = #tpu.core_type<tc>, window_params = [{transform_indices = @transform_0, window_bounds = array<i64: 2, 8, 32>}, {transform_indices = @transform_1, window_bounds = array<i64: 1, 32, 96>}, {transform_indices = @transform_2, window_bounds = array<i64: 1, 32, 32>}, {transform_indices = @transform_3, window_bounds = array<i64: 1, 32, 128>}, {transform_indices = @transform_4, window_bounds = array<i64: 1, 128, 32>}, {pipeline_mode = #tpu.pipeline_mode<synchronous>, transform_indices = @transform_5, window_bounds = array<i64: 2, 5, 32>}, {pipeline_mode = #tpu.pipeline_mode<synchronous>, transform_indices = @transform_6, window_bounds = array<i64: 2, 1, 128>}, {pipeline_mode = #tpu.pipeline_mode<synchronous>, transform_indices = @transform_7, window_bounds = array<i64: 1, 32>}, {pipeline_mode = #tpu.pipeline_mode<synchronous>, transform_indices = @transform_8, window_bounds = array<i64: 1, 32>}, {transform_indices = @transform_9, window_bounds = array<i64: 2, 8, 32>}]} {
    %c0_i32 = arith.constant 0 : i32
    %0 = arith.cmpi eq, %arg1, %c0_i32 : i32
    %1 = arith.extui %0 : i1 to i32
    %c0_i32_0 = arith.constant 0 : i32
    %2 = arith.cmpi ne, %1, %c0_i32_0 : i32
    scf.if %2 {
      %c0_42 = arith.constant 0 : index
      %c0_43 = arith.constant 0 : index
      %c0_44 = arith.constant 0 : index
      %127 = vector.load %arg2[%c0_42, %c0_43, %c0_44] : memref<2x8x32xf32, #tpu.memory_space<vmem>>, vector<2x8x32xf32>
      %c0_45 = arith.constant 0 : index
      %c0_46 = arith.constant 0 : index
      %c0_47 = arith.constant 0 : index
      %128 = vector.load %arg11[%c0_45, %c0_46, %c0_47] : memref<2x8x32xf32, #tpu.memory_space<vmem>>, vector<2x8x32xf32>
      tpu.vector_store %arg11[%c0_45, %c0_46, %c0_47], %127 {strides = array<i32>} : memref<2x8x32xf32, #tpu.memory_space<vmem>>, vector<2x8x32xf32>,
    } else {
    }
    %c0 = arith.constant 0 : index
    %c0_1 = arith.constant 0 : index
    %c0_2 = arith.constant 0 : index
    %3 = vector.load %arg11[%c0, %c0_1, %c0_2] : memref<2x8x32xf32, #tpu.memory_space<vmem>>, vector<2x8x32xf32>
    %4 = vector.shape_cast %3 : vector<2x8x32xf32> to vector<16x32xf32>
    %5 = arith.index_cast %arg1 : i32 to index
    %c0_3 = arith.constant 0 : index
    %c0_4 = arith.constant 0 : index
    %6 = vector.load %arg7[%5, %c0_3, %c0_4] : memref<2x5x32xf32, #tpu.memory_space<vmem>>, vector<1x5x32xf32>
    %7 = vector.shape_cast %6 : vector<1x5x32xf32> to vector<5x32xf32>
    %8 = arith.index_cast %arg1 : i32 to index
    %c0_5 = arith.constant 0 : index
    %c0_6 = arith.constant 0 : index
    %9 = vector.load %arg8[%8, %c0_5, %c0_6] : memref<2x1x128xf32, #tpu.memory_space<vmem>>, vector<1x1x128xf32>
    %10 = vector.shape_cast %9 : vector<1x1x128xf32> to vector<1x128xf32>
    %11 = vector.extract_strided_slice %7 {offsets = [0, 0], sizes = [1, 32], strides = [1, 1]} : vector<5x32xf32> to vector<1x32xf32>
    %12 = vector.extract_strided_slice %7 {offsets = [1, 0], sizes = [1, 32], strides = [1, 1]} : vector<5x32xf32> to vector<1x32xf32>
    %cst = arith.constant dense<0.000000e+00> : vector<16xf32>
    %13 = vector.multi_reduction <add>, %4, %cst [1] : vector<16x32xf32> to vector<16xf32>
    %14 = vector.shape_cast %13 : vector<16xf32> to vector<16x1xf32>
    %cst_7 = arith.constant 3.200000e+01 : f32
    %15 = vector.broadcast %cst_7 : f32 to vector<16x1xf32>
    %16 = arith.divf %14, %15 : vector<16x1xf32>
    %17 = vector.broadcast %16 : vector<16x1xf32> to vector<16x32xf32>
    %18 = arith.subf %4, %17 : vector<16x32xf32>
    %19 = arith.mulf %18, %18 : vector<16x32xf32>
    %cst_8 = arith.constant dense<0.000000e+00> : vector<16xf32>
    %20 = vector.multi_reduction <add>, %19, %cst_8 [1] : vector<16x32xf32> to vector<16xf32>
    %21 = vector.shape_cast %20 : vector<16xf32> to vector<16x1xf32>
    %cst_9 = arith.constant 3.200000e+01 : f32
    %22 = vector.broadcast %cst_9 : f32 to vector<16x1xf32>
    %23 = arith.divf %21, %22 : vector<16x1xf32>
    %24 = vector.broadcast %16 : vector<16x1xf32> to vector<16x32xf32>
    %25 = arith.subf %4, %24 : vector<16x32xf32>
    %cst_10 = arith.constant 9.99999974E-6 : f32
    %26 = vector.broadcast %cst_10 : f32 to vector<16x1xf32>
    %27 = arith.addf %23, %26 : vector<16x1xf32>
    %28 = math.rsqrt %27 : vector<16x1xf32>
    %29 = vector.broadcast %28 : vector<16x1xf32> to vector<16x32xf32>
    %30 = arith.mulf %25, %29 : vector<16x32xf32>
    %31 = vector.broadcast %11 : vector<1x32xf32> to vector<16x32xf32>
    %32 = arith.mulf %30, %31 : vector<16x32xf32>
    %33 = vector.broadcast %12 : vector<1x32xf32> to vector<16x32xf32>
    %34 = arith.addf %32, %33 : vector<16x32xf32>
    %35 = arith.truncf %34 : vector<16x32xf32> to vector<16x32xbf16>
    %c0_11 = arith.constant 0 : index
    %c0_12 = arith.constant 0 : index
    %c0_13 = arith.constant 0 : index
    %36 = vector.load %arg3[%c0_11, %c0_12, %c0_13] : memref<1x32x96xbf16, #tpu.memory_space<vmem>>, vector<1x32x96xbf16>
    %37 = vector.shape_cast %36 : vector<1x32x96xbf16> to vector<32x96xbf16>
    %cst_14 = arith.constant dense<0.000000e+00> : vector<16x96xf32>
    %38 = tpu.matmul %35, %37, %cst_14 {dimension_numbers = #tpu.dot_dimension_numbers<[1], [0], [0], [1], [0, 0, 1, 1], [], []>} : vector<16x32xbf16>, vector<32x96xbf16>, vector<16x96xf32> -> vector<16x96xf32>
    %39 = vector.extract_strided_slice %38 {offsets = [0, 0], sizes = [16, 32], strides = [1, 1]} : vector<16x96xf32> to vector<16x32xf32>
    %40 = vector.shape_cast %39 : vector<16x32xf32> to vector<2x8x2x16xf32>
    %41 = tpu.transpose %40, [0, 2, 1, 3] : vector<2x8x2x16xf32> -> vector<2x2x8x16xf32>
    %42 = vector.shape_cast %41 : vector<2x2x8x16xf32> to vector<4x8x16xf32>
    %43 = arith.truncf %42 : vector<4x8x16xf32> to vector<4x8x16xbf16>
    %44 = vector.extract_strided_slice %38 {offsets = [0, 32], sizes = [16, 32], strides = [1, 1]} : vector<16x96xf32> to vector<16x32xf32>
    %45 = vector.shape_cast %44 : vector<16x32xf32> to vector<2x8x2x16xf32>
    %46 = tpu.transpose %45, [0, 2, 1, 3] : vector<2x8x2x16xf32> -> vector<2x2x8x16xf32>
    %47 = vector.shape_cast %46 : vector<2x2x8x16xf32> to vector<4x8x16xf32>
    %48 = arith.truncf %47 : vector<4x8x16xf32> to vector<4x8x16xbf16>
    %49 = vector.extract_strided_slice %38 {offsets = [0, 64], sizes = [16, 32], strides = [1, 1]} : vector<16x96xf32> to vector<16x32xf32>
    %50 = vector.shape_cast %49 : vector<16x32xf32> to vector<2x8x2x16xf32>
    %51 = tpu.transpose %50, [0, 2, 1, 3] : vector<2x8x2x16xf32> -> vector<2x2x8x16xf32>
    %52 = vector.shape_cast %51 : vector<2x2x8x16xf32> to vector<4x8x16xf32>
    %53 = arith.truncf %52 : vector<4x8x16xf32> to vector<4x8x16xbf16>
    "tpu.trace_start"() <{level = 10 : i32, message = "gqd,gkd->gqk"}> : () -> ()
    %cst_15 = arith.constant dense<0.000000e+00> : vector<4x8x8xf32>
    %54 = tpu.matmul %43, %48, %cst_15 {dimension_numbers = #tpu.dot_dimension_numbers<[2], [2], [1], [1], [0, 0, 0, 1, 1, 1], [0], [0]>} : vector<4x8x16xbf16>, vector<4x8x16xbf16>, vector<4x8x8xf32> -> vector<4x8x8xf32>
    "tpu.trace_stop"() : () -> ()
    %cst_16 = arith.constant dense<0xFF800000> : vector<4x8xf32>
    %55 = vector.multi_reduction <maximumf>, %54, %cst_16 [2] : vector<4x8x8xf32> to vector<4x8xf32>
    %56 = vector.shape_cast %55 : vector<4x8xf32> to vector<4x8x1xf32>
    %57 = vector.broadcast %56 : vector<4x8x1xf32> to vector<4x8x8xf32>
    %58 = arith.subf %54, %57 : vector<4x8x8xf32>
    %59 = math.exp %58 : vector<4x8x8xf32>
    %cst_17 = arith.constant dense<0.000000e+00> : vector<4x8xf32>
    %60 = vector.multi_reduction <add>, %59, %cst_17 [2] : vector<4x8x8xf32> to vector<4x8xf32>
    %61 = vector.shape_cast %60 : vector<4x8xf32> to vector<4x8x1xf32>
    %62 = tpu.reciprocal %61 {approx = true} : vector<4x8x1xf32> -> vector<4x8x1xf32>
    %63 = vector.broadcast %62 : vector<4x8x1xf32> to vector<4x8x8xf32>
    %64 = arith.mulf %59, %63 : vector<4x8x8xf32>
    %65 = arith.truncf %64 : vector<4x8x8xf32> to vector<4x8x8xbf16>
    "tpu.trace_start"() <{level = 10 : i32, message = "gqk,gkd->gqd"}> : () -> ()
    %cst_18 = arith.constant dense<0.000000e+00> : vector<4x8x16xf32>
    %66 = tpu.matmul %65, %53, %cst_18 {dimension_numbers = #tpu.dot_dimension_numbers<[2], [1], [1], [2], [0, 0, 0, 1, 1, 2], [0], [0]>} : vector<4x8x8xbf16>, vector<4x8x16xbf16>, vector<4x8x16xf32> -> vector<4x8x16xf32>
    "tpu.trace_stop"() : () -> ()
    %67 = vector.shape_cast %66 : vector<4x8x16xf32> to vector<2x2x8x16xf32>
    %68 = tpu.transpose %67, [0, 2, 1, 3] : vector<2x2x8x16xf32> -> vector<2x8x2x16xf32>
    %69 = vector.shape_cast %68 : vector<2x8x2x16xf32> to vector<16x32xf32>
    %70 = arith.truncf %69 : vector<16x32xf32> to vector<16x32xbf16>
    %c0_19 = arith.constant 0 : index
    %c0_20 = arith.constant 0 : index
    %c0_21 = arith.constant 0 : index
    %71 = vector.load %arg4[%c0_19, %c0_20, %c0_21] : memref<1x32x32xbf16, #tpu.memory_space<vmem>>, vector<1x32x32xbf16>
    %72 = vector.shape_cast %71 : vector<1x32x32xbf16> to vector<32x32xbf16>
    %cst_22 = arith.constant dense<0.000000e+00> : vector<16x32xf32>
    %73 = tpu.matmul %70, %72, %cst_22 {dimension_numbers = #tpu.dot_dimension_numbers<[1], [0], [0], [1], [0, 0, 1, 1], [], []>} : vector<16x32xbf16>, vector<32x32xbf16>, vector<16x32xf32> -> vector<16x32xf32>
    %74 = arith.addf %4, %73 : vector<16x32xf32>
    %75 = vector.extract_strided_slice %7 {offsets = [2, 0], sizes = [1, 32], strides = [1, 1]} : vector<5x32xf32> to vector<1x32xf32>
    %76 = vector.extract_strided_slice %7 {offsets = [3, 0], sizes = [1, 32], strides = [1, 1]} : vector<5x32xf32> to vector<1x32xf32>
    %cst_23 = arith.constant dense<0.000000e+00> : vector<16xf32>
    %77 = vector.multi_reduction <add>, %74, %cst_23 [1] : vector<16x32xf32> to vector<16xf32>
    %78 = vector.shape_cast %77 : vector<16xf32> to vector<16x1xf32>
    %cst_24 = arith.constant 3.200000e+01 : f32
    %79 = vector.broadcast %cst_24 : f32 to vector<16x1xf32>
    %80 = arith.divf %78, %79 : vector<16x1xf32>
    %81 = vector.broadcast %80 : vector<16x1xf32> to vector<16x32xf32>
    %82 = arith.subf %74, %81 : vector<16x32xf32>
    %83 = arith.mulf %82, %82 : vector<16x32xf32>
    %cst_25 = arith.constant dense<0.000000e+00> : vector<16xf32>
    %84 = vector.multi_reduction <add>, %83, %cst_25 [1] : vector<16x32xf32> to vector<16xf32>
    %85 = vector.shape_cast %84 : vector<16xf32> to vector<16x1xf32>
    %cst_26 = arith.constant 3.200000e+01 : f32
    %86 = vector.broadcast %cst_26 : f32 to vector<16x1xf32>
    %87 = arith.divf %85, %86 : vector<16x1xf32>
    %88 = vector.broadcast %80 : vector<16x1xf32> to vector<16x32xf32>
    %89 = arith.subf %74, %88 : vector<16x32xf32>
    %cst_27 = arith.constant 9.99999974E-6 : f32
    %90 = vector.broadcast %cst_27 : f32 to vector<16x1xf32>
    %91 = arith.addf %87, %90 : vector<16x1xf32>
    %92 = math.rsqrt %91 : vector<16x1xf32>
    %93 = vector.broadcast %92 : vector<16x1xf32> to vector<16x32xf32>
    %94 = arith.mulf %89, %93 : vector<16x32xf32>
    %95 = vector.broadcast %75 : vector<1x32xf32> to vector<16x32xf32>
    %96 = arith.mulf %94, %95 : vector<16x32xf32>
    %97 = vector.broadcast %76 : vector<1x32xf32> to vector<16x32xf32>
    %98 = arith.addf %96, %97 : vector<16x32xf32>
    %99 = arith.truncf %98 : vector<16x32xf32> to vector<16x32xbf16>
    %c0_28 = arith.constant 0 : index
    %c0_29 = arith.constant 0 : index
    %c0_30 = arith.constant 0 : index
    %100 = vector.load %arg5[%c0_28, %c0_29, %c0_30] : memref<1x32x128xbf16, #tpu.memory_space<vmem>>, vector<1x32x128xbf16>
    %101 = vector.shape_cast %100 : vector<1x32x128xbf16> to vector<32x128xbf16>
    %cst_31 = arith.constant dense<0.000000e+00> : vector<16x128xf32>
    %102 = tpu.matmul %99, %101, %cst_31 {dimension_numbers = #tpu.dot_dimension_numbers<[1], [0], [0], [1], [0, 0, 1, 1], [], []>} : vector<16x32xbf16>, vector<32x128xbf16>, vector<16x128xf32> -> vector<16x128xf32>
    %103 = vector.broadcast %10 : vector<1x128xf32> to vector<16x128xf32>
    %104 = arith.addf %102, %103 : vector<16x128xf32>
    %cst_32 = arith.constant 5.000000e-01 : f32
    %105 = vector.broadcast %cst_32 : f32 to vector<16x128xf32>
    %106 = arith.mulf %105, %104 : vector<16x128xf32>
    %cst_33 = arith.constant 0.707106769 : f32
    %107 = vector.broadcast %cst_33 : f32 to vector<16x128xf32>
    %108 = arith.mulf %104, %107 : vector<16x128xf32>
    %109 = math.erf %108 : vector<16x128xf32>
    %cst_34 = arith.constant 1.000000e+00 : f32
    %110 = vector.broadcast %cst_34 : f32 to vector<16x128xf32>
    %111 = arith.addf %110, %109 : vector<16x128xf32>
    %112 = arith.mulf %106, %111 : vector<16x128xf32>
    %113 = arith.truncf %112 : vector<16x128xf32> to vector<16x128xbf16>
    %c0_35 = arith.constant 0 : index
    %c0_36 = arith.constant 0 : index
    %c0_37 = arith.constant 0 : index
    %114 = vector.load %arg6[%c0_35, %c0_36, %c0_37] : memref<1x128x32xbf16, #tpu.memory_space<vmem>>, vector<1x128x32xbf16>
    %115 = vector.shape_cast %114 : vector<1x128x32xbf16> to vector<128x32xbf16>
    %cst_38 = arith.constant dense<0.000000e+00> : vector<16x32xf32>
    %116 = tpu.matmul %113, %115, %cst_38 {dimension_numbers = #tpu.dot_dimension_numbers<[1], [0], [0], [1], [0, 0, 1, 1], [], []>} : vector<16x128xbf16>, vector<128x32xbf16>, vector<16x32xf32> -> vector<16x32xf32>
    %117 = vector.extract_strided_slice %7 {offsets = [4, 0], sizes = [1, 32], strides = [1, 1]} : vector<5x32xf32> to vector<1x32xf32>
    %118 = vector.broadcast %117 : vector<1x32xf32> to vector<16x32xf32>
    %119 = arith.addf %116, %118 : vector<16x32xf32>
    %120 = arith.addf %74, %119 : vector<16x32xf32>
    %c1_i32 = arith.constant 1 : i32
    %121 = arith.cmpi ne, %arg1, %c1_i32 : i32
    %122 = arith.extui %121 : i1 to i32
    %c0_i32_39 = arith.constant 0 : i32
    %123 = arith.cmpi ne, %122, %c0_i32_39 : i32
    scf.if %123 {
      %127 = vector.shape_cast %120 : vector<16x32xf32> to vector<2x8x32xf32>
      %c0_42 = arith.constant 0 : index
      %c0_43 = arith.constant 0 : index
      %c0_44 = arith.constant 0 : index
      %128 = vector.load %arg11[%c0_42, %c0_43, %c0_44] : memref<2x8x32xf32, #tpu.memory_space<vmem>>, vector<2x8x32xf32>
      tpu.vector_store %arg11[%c0_42, %c0_43, %c0_44], %127 {strides = array<i32>} : memref<2x8x32xf32, #tpu.memory_space<vmem>>, vector<2x8x32xf32>,
    } else {
    }
    %c1_i32_40 = arith.constant 1 : i32
    %124 = arith.cmpi eq, %arg1, %c1_i32_40 : i32
    %125 = arith.extui %124 : i1 to i32
    %c0_i32_41 = arith.constant 0 : i32
    %126 = arith.cmpi ne, %125, %c0_i32_41 : i32
    scf.if %126 {
      %c0_42 = arith.constant 0 : index
      %c0_43 = arith.constant 0 : index
      %127 = vector.load %arg9[%c0_42, %c0_43] : memref<1x32xf32, #tpu.memory_space<vmem>>, vector<1x32xf32>
      %c0_44 = arith.constant 0 : index
      %c0_45 = arith.constant 0 : index
      %128 = vector.load %arg10[%c0_44, %c0_45] : memref<1x32xf32, #tpu.memory_space<vmem>>, vector<1x32xf32>
      %cst_46 = arith.constant dense<0.000000e+00> : vector<16xf32>
      %129 = vector.multi_reduction <add>, %120, %cst_46 [1] : vector<16x32xf32> to vector<16xf32>
      %130 = vector.shape_cast %129 : vector<16xf32> to vector<16x1xf32>
      %cst_47 = arith.constant 3.200000e+01 : f32
      %131 = vector.broadcast %cst_47 : f32 to vector<16x1xf32>
      %132 = arith.divf %130, %131 : vector<16x1xf32>
      %133 = vector.broadcast %132 : vector<16x1xf32> to vector<16x32xf32>
      %134 = arith.subf %120, %133 : vector<16x32xf32>
      %135 = arith.mulf %134, %134 : vector<16x32xf32>
      %cst_48 = arith.constant dense<0.000000e+00> : vector<16xf32>
      %136 = vector.multi_reduction <add>, %135, %cst_48 [1] : vector<16x32xf32> to vector<16xf32>
      %137 = vector.shape_cast %136 : vector<16xf32> to vector<16x1xf32>
      %cst_49 = arith.constant 3.200000e+01 : f32
      %138 = vector.broadcast %cst_49 : f32 to vector<16x1xf32>
      %139 = arith.divf %137, %138 : vector<16x1xf32>
      %140 = vector.broadcast %132 : vector<16x1xf32> to vector<16x32xf32>
      %141 = arith.subf %120, %140 : vector<16x32xf32>
      %cst_50 = arith.constant 9.99999974E-6 : f32
      %142 = vector.broadcast %cst_50 : f32 to vector<16x1xf32>
      %143 = arith.addf %139, %142 : vector<16x1xf32>
      %144 = math.rsqrt %143 : vector<16x1xf32>
      %145 = vector.broadcast %144 : vector<16x1xf32> to vector<16x32xf32>
      %146 = arith.mulf %141, %145 : vector<16x32xf32>
      %147 = vector.broadcast %127 : vector<1x32xf32> to vector<16x32xf32>
      %148 = arith.mulf %146, %147 : vector<16x32xf32>
      %149 = vector.broadcast %128 : vector<1x32xf32> to vector<16x32xf32>
      %150 = arith.addf %148, %149 : vector<16x32xf32>
      %151 = vector.shape_cast %150 : vector<16x32xf32> to vector<2x8x32xf32>
      %c0_51 = arith.constant 0 : index
      %c0_52 = arith.constant 0 : index
      %c0_53 = arith.constant 0 : index
      %152 = vector.load %arg11[%c0_51, %c0_52, %c0_53] : memref<2x8x32xf32, #tpu.memory_space<vmem>>, vector<2x8x32xf32>
      tpu.vector_store %arg11[%c0_51, %c0_52, %c0_53], %151 {strides = array<i32>} : memref<2x8x32xf32, #tpu.memory_space<vmem>>, vector<2x8x32xf32>,
    } else {
    }
    return
  }
  func.func @transform_0(%arg0: i32, %arg1: i32) -> (i32, i32, i32) {
    %c0_i32 = arith.constant 0 : i32
    %c0_i32_0 = arith.constant 0 : i32
    %c0_i32_1 = arith.constant 0 : i32
    return %arg0, %c0_i32, %c0_i32_0 : i32, i32, i32
  }
  func.func @transform_1(%arg0: i32, %arg1: i32) -> (i32, i32, i32) {
    %c0_i32 = arith.constant 0 : i32
    %c0_i32_0 = arith.constant 0 : i32
    %c0_i32_1 = arith.constant 0 : i32
    return %arg1, %c0_i32, %c0_i32_0 : i32, i32, i32
  }
  func.func @transform_2(%arg0: i32, %arg1: i32) -> (i32, i32, i32) {
    %c0_i32 = arith.constant 0 : i32
    %c0_i32_0 = arith.constant 0 : i32
    %c0_i32_1 = arith.constant 0 : i32
    return %arg1, %c0_i32, %c0_i32_0 : i32, i32, i32
  }
  func.func @transform_3(%arg0: i32, %arg1: i32) -> (i32, i32, i32) {
    %c0_i32 = arith.constant 0 : i32
    %c0_i32_0 = arith.constant 0 : i32
    %c0_i32_1 = arith.constant 0 : i32
    return %arg1, %c0_i32, %c0_i32_0 : i32, i32, i32
  }
  func.func @transform_4(%arg0: i32, %arg1: i32) -> (i32, i32, i32) {
    %c0_i32 = arith.constant 0 : i32
    %c0_i32_0 = arith.constant 0 : i32
    %c0_i32_1 = arith.constant 0 : i32
    return %arg1, %c0_i32, %c0_i32_0 : i32, i32, i32
  }
  func.func @transform_5(%arg0: i32, %arg1: i32) -> (i32, i32, i32) {
    %c0_i32 = arith.constant 0 : i32
    %c0_i32_0 = arith.constant 0 : i32
    %c0_i32_1 = arith.constant 0 : i32
    %c0_i32_2 = arith.constant 0 : i32
    return %c0_i32, %c0_i32_0, %c0_i32_1 : i32, i32, i32
  }
  func.func @transform_6(%arg0: i32, %arg1: i32) -> (i32, i32, i32) {
    %c0_i32 = arith.constant 0 : i32
    %c0_i32_0 = arith.constant 0 : i32
    %c0_i32_1 = arith.constant 0 : i32
    %c0_i32_2 = arith.constant 0 : i32
    return %c0_i32, %c0_i32_0, %c0_i32_1 : i32, i32, i32
  }
  func.func @transform_7(%arg0: i32, %arg1: i32) -> (i32, i32) {
    %c0_i32 = arith.constant 0 : i32
    %c0_i32_0 = arith.constant 0 : i32
    %c0_i32_1 = arith.constant 0 : i32
    return %c0_i32, %c0_i32_0 : i32, i32
  }
  func.func @transform_8(%arg0: i32, %arg1: i32) -> (i32, i32) {
    %c0_i32 = arith.constant 0 : i32
    %c0_i32_0 = arith.constant 0 : i32
    %c0_i32_1 = arith.constant 0 : i32
    return %c0_i32, %c0_i32_0 : i32, i32
  }
  func.func @transform_9(%arg0: i32, %arg1: i32) -> (i32, i32, i32) {
    %c0_i32 = arith.constant 0 : i32
    %c0_i32_0 = arith.constant 0 : i32
    %c0_i32_1 = arith.constant 0 : i32
    return %arg0, %c0_i32, %c0_i32_0 : i32, i32, i32
  }
}

</mosaic_0001>

<bundles_post_ra>
// kernel: layout_embedder_forward.1
= control target key start
LH: loop header
LB: loop body
LE: loop exit
PB: predicated region body
PF: predicated region fallthrough
CT: control target
= control target key end

     0   :  { %14 = vsyncpa [#allocation3], 0  ;;  %s2314_s30 = smov 0   ;;  %s2316_s10 = smov 0   ;;  %s2823_s0 = inlined_call_operand.vmem [shape: f32[2,8,32], index: 0, kind: input, shape index: {}]   ;;  %s2824_s1 = inlined_call_operand.vmem [shape: bf16[2,32,96], index: 1, kind: input, shape index: {}]   ;;  %s2825_s2 = inlined_call_operand.vmem [shape: bf16[2,32,32], index: 2, kind: input, shape index: {}]   ;;  %s2826_s3 = inlined_call_operand.vmem [shape: bf16[2,32,128], index: 3, kind: input, shape index: {}]   ;;  %s2827_s4 = inlined_call_operand.vmem [shape: bf16[2,128,32], index: 4, kind: input, shape index: {}]   ;;  %s2828_s5 = inlined_call_operand.vmem [shape: f32[2,5,32], index: 5, kind: input, shape index: {}]   ;;  %s2829_s6 = inlined_call_operand.vmem [shape: f32[2,1,128], index: 6, kind: input, shape index: {}]   ;;  %s2830_s7 = inlined_call_operand.vmem [shape: f32[1,32], index: 7, kind: input, shape index: {}]   ;;  %s2831_s8 = inlined_call_operand.vmem [shape: f32[1,32], index: 8, kind: input, shape index: {}]   ;;  %s2832_s9 = inlined_call_operand.hbm [shape: f32[2,8,32], index: 9, kind: output, shape index: {}]  }
   0x1   :  { %s2318_s11 = smov 0  }
   0x2 LB: > { %s1985_s12 = sadd.s32 4294967295, %s2252_s11   ;;  %s29_s13 = sadd.s32 1, %s2248_s10  ;;  %s2252_s11 = sphi %s2318_s11, %s20_s11   ;;  %s2248_s10 = sphi %s2316_s10, %s2834_s10   ;;  %s2244_s30 = sphi %s2314_s30, %s2833_s30  }
   0x3   : > { %p30_p0 = scmp.ge.s32.totalorder %s29_s13, 2  ;;  %p1989_p1 = scmp.ge.s32.totalorder %s2252_s11, 1 }
   0x4   : > { %p341_p2 = scmp.lt.s32.totalorder %s2252_s11, 3 }
   0x5   : > { %s2836_s13 = smov (%p30_p0, %s29_s13), 0 }
   0x6   : > { %p342_p3 = pnand %p1989_p1, %p341_p2 }
   0x7   : > { %p398_p4 = scmp.lt.s32.totalorder (!%p342_p3), %s2244_s30, 1  ;;  %p1998_p5 = scmp.ne.s32.totalorder (!%p342_p3), %s2244_s30, 0 }
   0x8   : > { %345 = sbr.rel (%p342_p3) target bundleno = 2395 (0x95b), region = 56 }
   0xd   : > { %s399_s14 = scalar_select %p398_p4, %s2244_s30, 1 }
   0xe   : > { %423 = sbr.rel (%p1998_p5) target bundleno = 22 (0x16), region = 60 }
   0xf   : > { %s2075_s15 = sshll.u32 %s399_s14, 4  ;;  %s2078_s16 = sshll.u32 %s399_s14, 6 }
  0x10   : > { %s2340_s19 = scalar_lea.vmem %s2824_s1, %s2075_s15  ;;  %s2345_s22 = scalar_lea.vmem %s2825_s2, %s2075_s15 }
  0x11   : > { %s2350_s25 = scalar_lea.vmem %s2826_s3, %s2075_s15  ;;  %s2355_s28 = scalar_lea.vmem %s2827_s4, %s2078_s16 }
  0x13   : > { %v424_v0 = vld [vmem:[%s2823_s0] sm:$0xff]  ;;  %vm426_vm0 = vcmask 261120   ;;  %v425_v1 = vld [vmem:[%s2823_s0 + $0x8] sm:$0xff] }
  0x14   : > { %427 = vst.msk [vmem:[#allocation2] sm:$0xff] %vm426_vm0, %v424_v0 }
  0x15   : > { %428 = vst.msk [vmem:[#allocation2 + $0x8] sm:$0xff] %vm426_vm0, %v425_v1 }
  0x16 PF: > { %vm436_vm1 = vcmask 261120   ;;  %v2254_v6 = vmov 32.0   ;;  %v2080_v23 = vld [vmem:[%s2340_s19 + $0x8] sm:$0xff]  ;;  %v2079_v25 = vld [vmem:[%s2340_s19] sm:$0xff]  ;;  %s1999_s15 = sshll.u32 %s2244_s30, 3  ;;  %s2255_s21 = smov 112  }
  0x17   : > { %2159 = vrcp.f32 %v2254_v6  ;;  %520 = vmatpush.bf16.msra.mxu0 %v2080_v23  ;;  %s2380_s20 = scalar_lea.vmem %s2828_s5, %s1999_s15  ;;  %s2256_s23 = smov 96   ;;  %v2257_v61 = vmov 1983009808   ;;  %vm537_vm9 = vcmask 1047556   ;;  %vm1113_vm10 = vcmask 130048  }
  0x18   : > { %v433_v42 = vld [vmem:[%s2380_s20] sm:$0x1f]  ;;  %v540_v62 = vunpack.c.l.s4 %v2257_v61  ;;  %vm1190_vm11 = vcmask 64512   ;;  %s2259_s24 = smov 64   ;;  %vm1242_vm12 = vcmask 1043456   ;;  %s2260_s26 = smov 16  }
  0x19   : > { %v488_v45 = vperm.slane %v433_v42, 0  ;;  %v491_v50 = vperm.slane %v433_v42, 1  ;;  %s434_s29 = scalar_lea.vmem %s2829_s6, %s2244_s30  ;;  %p2069_p6 = scmp.eq.s32.totalorder %s2244_s30, 1 }
  0x1a   : > { %v2390_v63 = vunpack.c.0.s8 %v540_v62 }
  0x1b   : > { %v429_v2 = vld [vmem:[#allocation2] sm:$0xff]  ;;  %521 = vmatpush.bf16.msra.mxu0 %v2079_v25 }
  0x1c   : > { %v437_v3 = vsel %vm436_vm1, %v429_v2, 0.0  ;;  %v430_v4 = vld [vmem:[#allocation2 + $0x8] sm:$0xff] }
  0x1d   : > { %438 = vadd.xlane.f32.xlu0 %v437_v3  ;;  %v440_v5 = vsel %vm436_vm1, %v430_v4, 0.0  ;;  %v2160_v7 = vpop.eup %2159  ;;  %v2258_v3 = vmov 1934713408  }
  0x1e   : > { %v444_v8 = vmul.f32 32.0, %v2160_v7  ;;  %vm448_vm2 = vweird.f32 %v2160_v7 }
  0x20   : > { %v445_v9 = vsub.f32 1.0, %v444_v8 }
  0x22   : > { %v446_v10 = vmul.f32 %v2160_v7, %v445_v9 }
  0x24   : > { %v447_v11 = vadd.f32 %v2160_v7, %v446_v10 }
  0x25   : > { %441 = vadd.xlane.f32.xlu0 %v440_v5 }
  0x26   : > { %v2366_v12 = vsel %vm448_vm2, %v2160_v7, %v447_v11 }
  0x90   : > { %v439_v13 = vpop.xlane.xlu0 %438 }
  0x91   : > { %v450_v14 = vmul.f32 %v2366_v12, %v439_v13 }
  0x93   : > { %v452_v15 = vsub.f32 %v429_v2, %v450_v14 }
  0x95   : > { %v454_v16 = vmul.f32 %v452_v15, %v452_v15 }
  0x97   : > { %v456_v17 = vsel %vm436_vm1, %v454_v16, 0.0 }
  0x98   : > { %457 = vadd.xlane.f32.xlu1 %v456_v17  ;;  %v442_v18 = vpop.xlane.xlu0 %441 }
  0x99   : > { %v451_v19 = vmul.f32 %v2366_v12, %v442_v18 }
  0x9b   : > { %v453_v20 = vsub.f32 %v430_v4, %v451_v19  ;;  %v562_v4 = vunpack.c.l.s4 %v2258_v3 }
  0x9d   : > { %v455_v21 = vmul.f32 %v453_v20, %v453_v20  ;;  %v2397_v10 = vunpack.c.0.s8 %v562_v4 }
  0x9f   : > { %v459_v22 = vsel %vm436_vm1, %v455_v21, 0.0 }
  0xa0   : > { %460 = vadd.xlane.f32.xlu1 %v459_v22 }
 0x10b   : > { %v458_v24 = vpop.xlane.xlu1 %457 }
 0x10c   : > { %v462_v26 = vmul.f32 %v458_v24, %v2366_v12 }
 0x10e   : > { %v464_v27 = vadd.f32 1e-05, %v462_v26 }
 0x110   : > { %2161 = vrsqrt.f32 %v464_v27  ;;  %vm472_vm4 = vweird.f32 %v464_v27 }
 0x113   : > { %v461_v28 = vpop.xlane.xlu1 %460 }
 0x114   : > { %v463_v29 = vmul.f32 %v461_v28, %v2366_v12 }
 0x116   : > { %v2162_v30 = vpop.eup %2161  ;;  %v465_v31 = vadd.f32 1e-05, %v463_v29 }
 0x117   : > { %v467_v32 = vmul.f32 %v2162_v30, %v464_v27  ;;  %vm473_vm3 = vweird.f32 %v2162_v30 }
 0x118   : > { %2163 = vrsqrt.f32 %v465_v31  ;;  %vm474_vm5 = vmor %vm472_vm4, %vm473_vm3  ;;  %vm482_vm7 = vweird.f32 %v465_v31 }
 0x119   : > { %v468_v33 = vmul.f32 %v2162_v30, %v467_v32 }
 0x11b   : > { %v469_v34 = vmul.f32 0.5, %v468_v33 }
 0x11d   : > { %v470_v35 = vsub.f32 1.5, %v469_v34 }
 0x11e   : > { %v2164_v36 = vpop.eup %2163 }
 0x11f   : > { %v471_v37 = vmul.f32 %v2162_v30, %v470_v35  ;;  %v477_v38 = vmul.f32 %v2164_v36, %v465_v31  ;;  %vm483_vm6 = vweird.f32 %v2164_v36 }
 0x120   : > { %vm484_vm8 = vmor %vm482_vm7, %vm483_vm6 }
 0x121   : > { %v478_v39 = vmul.f32 %v2164_v36, %v477_v38  ;;  %v475_v40 = vsel %vm474_vm5, %v2162_v30, %v471_v37 }
 0x122   : > { %v486_v44 = vmul.f32 %v475_v40, %v452_v15 }
 0x123   : > { %v479_v41 = vmul.f32 0.5, %v478_v39 }
 0x124   : > { %v489_v49 = vmul.f32 %v488_v45, %v486_v44 }
 0x125   : > { %v480_v43 = vsub.f32 1.5, %v479_v41 }
 0x126   : > { %v492_v52 = vadd.f32 %v491_v50, %v489_v49 }
 0x127   : > { %v481_v46 = vmul.f32 %v2164_v36, %v480_v43 }
 0x129   : > { %v485_v47 = vsel %vm484_vm8, %v2164_v36, %v481_v46 }
 0x12a   : > { %v487_v48 = vmul.f32 %v485_v47, %v453_v20 }
 0x12c   : > { %v490_v51 = vmul.f32 %v488_v45, %v487_v48 }
 0x12e   : > { %v493_v53 = vadd.f32 %v491_v50, %v490_v51 }
 0x130   : > { %v494_v54 = vpack.c.bf16 %v493_v53, %v492_v52 }
 0x132   : > { %2008 = vmatmul.msk.bf16.vlgmr.msra.gmra.mxu0 %vm436_vm1, %v494_v54 }
 0x1af   : > { %v523_v55 = vpop.f32.mrf.mxu0 }
 0x1b0   : > { %v536_v22 = vrot.slane %v523_v55, 4  ;;  %v542_v29 = vperm.slane %v523_v55, %v2390_v63 }
 0x1b2   : > { %v538_v28 = vsel %vm537_vm9, 0.0, %v536_v22  ;;  %v559_v37 = vrot.slane %v542_v29, 4 }
 0x1b3   : > { %v546_v35 = vperm.slane %v538_v28, %v2390_v63 }
 0x1b5   : > { %v571_v43 = vrot.slane %v546_v35, 4 }
 0x1b7   : > { %v525_v56 = vpop.f32.mrf.mxu0 }
 0x1b8   : > { %532 = vrot.lane.b32.xlu2 %v525_v56, %s2255_s21  ;;  %v589_v0 = vrot.slane %v525_v56, 4  ;;  %v594_v1 = vperm.slane %v525_v56, %v2390_v63 }
 0x1ba   : > { %v590_v5 = vsel %vm537_vm9, 0.0, %v589_v0  ;;  %v611_v7 = vrot.slane %v594_v1, 4 }
 0x1bb   : > { %v598_v9 = vperm.slane %v590_v5, %v2390_v63 }
 0x1bd   : > { %v623_v15 = vrot.slane %v598_v9, 4 }
 0x1c0   : > { %530 = vrot.lane.b32.xlu2 %v523_v55, %s2255_s21 }
 0x212   : > { %v533_v57 = vpop.permute.xlu2 %532 }
 0x213   : > { %v2384_v58 = vpack.i.bf16 %v533_v57, %v525_v56  ;;  %v599_v2 = vrot.slane %v533_v57, 4  ;;  %v604_v6 = vperm.slane %v533_v57, %v2390_v63 }
 0x215   : > { %2134 = vrot.lane.b32.xlu0 %v2384_v58, %s2256_s23  ;;  %v600_v8 = vsel %vm537_vm9, 0.0, %v599_v2  ;;  %v609_v11 = vrot.slane %v604_v6, 4  ;;  %v612_v13 = vsel %vm537_vm9, %v604_v6, %v611_v7 }
 0x216   : > { %v608_v14 = vperm.slane %v600_v8, %v2390_v63  ;;  %v620_v16 = vperm.slane %v612_v13, %v2397_v10 }
 0x217   : > { %v610_v17 = vsel %vm537_vm9, %v609_v11, %v594_v1 }
 0x218   : > { %v621_v18 = vrot.slane %v608_v14, 4  ;;  %v624_v19 = vsel %vm537_vm9, %v608_v14, %v623_v15  ;;  %v616_v20 = vperm.slane %v610_v17, %v2397_v10  ;;  %v635_v21 = vrot.slane %v620_v16, 4 }
 0x219   : > { %v632_v23 = vperm.slane %v624_v19, %v2397_v10 }
 0x21a   : > { %v531_v59 = vpop.permute.xlu2 %530  ;;  %v622_v24 = vsel %vm537_vm9, %v621_v18, %v598_v9  ;;  %v633_v26 = vrot.slane %v616_v20, 4  ;;  %v636_v27 = vsel %vm537_vm9, 0.0, %v635_v21  ;;  %v679_v53 = vsel %vm537_vm9, %v635_v21, %v616_v20 }
 0x21b   : > { %v2387_v60 = vpack.i.bf16 %v531_v59, %v523_v55  ;;  %v547_v25 = vrot.slane %v531_v59, 4  ;;  %v628_v30 = vperm.slane %v622_v24, %v2397_v10  ;;  %v639_v31 = vrot.slane %v632_v23, 4 }
 0x21c   : > { %v684_v32 = vrot.slane %v636_v27, 4  ;;  %v552_v34 = vperm.slane %v531_v59, %v2390_v63  ;;  %v634_v36 = vsel %vm537_vm9, 0.0, %v633_v26  ;;  %v683_v62 = vperm.slane %v679_v53, %v2390_v63 }
 0x21d   : > { %2139 = vrot.lane.b32.xlu1 %v2387_v60, %s2256_s23  ;;  %v548_v33 = vsel %vm537_vm9, 0.0, %v547_v25  ;;  %v637_v38 = vrot.slane %v628_v30, 4  ;;  %v640_v39 = vsel %vm537_vm9, 0.0, %v639_v31  ;;  %v690_v0 = vsel %vm537_vm9, %v639_v31, %v628_v30 }
 0x21e   : > { %v556_v40 = vperm.slane %v548_v33, %v2390_v63  ;;  %v685_v41 = vsel %vm537_vm9, %v684_v32, %v634_v36  ;;  %v560_v42 = vsel %vm537_vm9, %v552_v34, %v559_v37  ;;  %v695_v44 = vrot.slane %v640_v39, 4 }
 0x21f   : > { %v557_v45 = vrot.slane %v552_v34, 4  ;;  %v638_v46 = vsel %vm537_vm9, 0.0, %v637_v38  ;;  %v689_v47 = vperm.slane %v685_v41, %v2390_v63  ;;  %v568_v48 = vperm.slane %v560_v42, %v2397_v10 }
 0x220   : > { %v569_v49 = vrot.slane %v556_v40, 4  ;;  %v572_v50 = vsel %vm537_vm9, %v556_v40, %v571_v43  ;;  %v696_v52 = vsel %vm537_vm9, %v695_v44, %v638_v46  ;;  %v694_v9 = vperm.slane %v690_v0, %v2390_v63 }
 0x221   : > { %v558_v51 = vsel %vm537_vm9, %v557_v45, %v542_v29  ;;  %v580_v54 = vperm.slane %v572_v50, %v2397_v10  ;;  %v583_v56 = vrot.slane %v568_v48, 4  ;;  %v701_v57 = vrot.slane %v689_v47, 4 }
 0x222   : > { %v570_v55 = vsel %vm537_vm9, %v569_v49, %v546_v35  ;;  %v564_v59 = vperm.slane %v558_v51, %v2397_v10  ;;  %v700_v61 = vperm.slane %v696_v52, %v2390_v63 }
 0x223   : > { %v2433_v1 = vperm.slane %v570_v55, %v2397_v10  ;;  %v2435_v2 = vrot.slane %v580_v54, 4  ;;  %v584_v4 = vsel %vm537_vm9, 0.0, %v583_v56  ;;  %v702_v7 = vsel %vm537_vm9, %v701_v57, %v683_v62 }
 0x224   : > { %v581_v8 = vrot.slane %v564_v59, 4  ;;  %v707_v11 = vrot.slane %v700_v61, 4  ;;  %v646_v19 = vrot.slane %v584_v4, 4  ;;  %v2446_v20 = vperm.slane %v702_v7, %v2397_v10 }
 0x225   : > { %v585_v17 = vrot.slane %v2433_v1, 4  ;;  %v588_v18 = vsel %vm537_vm9, 0.0, %v2435_v2  ;;  %v2455_v29 = vsel %vm537_vm9, %v583_v56, %v564_v59 }
 0x226   : > { %v582_v25 = vsel %vm537_vm9, 0.0, %v581_v8  ;;  %v708_v28 = vsel %vm537_vm9, %v707_v11, %v694_v9  ;;  %v657_v30 = vrot.slane %v588_v18, 4  ;;  %v715_v39 = vrot.slane %v2446_v20, 4 }
 0x227   : > { %v2462_v38 = vperm.slane %v708_v28, %v2397_v10  ;;  %v586_v40 = vsel %vm537_vm9, 0.0, %v585_v17  ;;  %v2467_v41 = vsel %vm537_vm9, %v646_v19, %v582_v25  ;;  %v645_v51 = vperm.slane %v2455_v29, %v2390_v63 }
 0x228   : > { %v651_v52 = vperm.slane %v2467_v41, %v2390_v63  ;;  %v2479_v53 = vsel %vm537_vm9, %v657_v30, %v586_v40 }
 0x287   : > { %v2135_v3 = vpop.permute.xlu0 %2134 }
 0x288   : > { %v2137_v5 = vunpack.i.h.bf16 %v2135_v3  ;;  %v2136_v6 = vunpack.i.l.bf16 %v2135_v3 }
 0x28a   : > { %v795_v13 = vrot.slane %v2137_v5, 4  ;;  %v800_v14 = vperm.slane %v2137_v5, %v2390_v63  ;;  %v785_v15 = vrot.slane %v2136_v6, 4  ;;  %v790_v16 = vperm.slane %v2136_v6, %v2390_v63 }
 0x28c   : > { %v796_v21 = vsel %vm537_vm9, 0.0, %v795_v13  ;;  %v805_v22 = vrot.slane %v800_v14, 4  ;;  %v786_v23 = vsel %vm537_vm9, 0.0, %v785_v15  ;;  %v807_v24 = vrot.slane %v790_v16, 4 }
 0x28d   : > { %v804_v26 = vperm.slane %v796_v21, %v2390_v63  ;;  %v794_v27 = vperm.slane %v786_v23, %v2390_v63 }
 0x28e   : > { %v806_v31 = vsel %vm537_vm9, %v805_v22, %v790_v16  ;;  %v808_v32 = vsel %vm537_vm9, %v800_v14, %v807_v24 }
 0x28f   : > { %v817_v33 = vrot.slane %v804_v26, 4  ;;  %v812_v34 = vperm.slane %v806_v31, %v2397_v10  ;;  %v816_v35 = vperm.slane %v808_v32, %v2397_v10  ;;  %v819_v36 = vrot.slane %v794_v27, 4  ;;  %v2140_v37 = vpop.permute.xlu1 %2139 }
 0x290   : > { %v2142_v48 = vunpack.i.h.bf16 %v2140_v37  ;;  %v2141_v49 = vunpack.i.l.bf16 %v2140_v37 }
 0x291   : > { %v818_v42 = vsel %vm537_vm9, %v817_v33, %v794_v27  ;;  %v820_v43 = vsel %vm537_vm9, %v804_v26, %v819_v36  ;;  %v829_v44 = vrot.slane %v812_v34, 4  ;;  %v831_v45 = vrot.slane %v816_v35, 4 }
 0x292   : > { %v824_v46 = vperm.slane %v818_v42, %v2397_v10  ;;  %v828_v47 = vperm.slane %v820_v43, %v2397_v10  ;;  %v743_v57 = vrot.slane %v2142_v48, 4  ;;  %v748_v61 = vperm.slane %v2142_v48, %v2390_v63 }
 0x293   : > { %v832_v50 = vsel %vm537_vm9, 0.0, %v831_v45  ;;  %v830_v59 = vsel %vm537_vm9, 0.0, %v829_v44  ;;  %v733_v62 = vrot.slane %v2141_v49, 4  ;;  %v738_v0 = vperm.slane %v2141_v49, %v2390_v63 }
 0x294   : > { %v833_v54 = vrot.slane %v824_v46, 4  ;;  %v835_v55 = vrot.slane %v828_v47, 4  ;;  %v880_v56 = vrot.slane %v832_v50, 4  ;;  %v875_v4 = vsel %vm537_vm9, %v831_v45, %v812_v34 }
 0x295   : > { %v744_v6 = vsel %vm537_vm9, 0.0, %v743_v57  ;;  %v753_v9 = vrot.slane %v748_v61, 4  ;;  %v734_v11 = vsel %vm537_vm9, 0.0, %v733_v62  ;;  %v755_v15 = vrot.slane %v738_v0, 4 }
 0x296   : > { %v836_v3 = vsel %vm537_vm9, 0.0, %v835_v55  ;;  %v881_v5 = vsel %vm537_vm9, %v880_v56, %v830_v59  ;;  %v752_v8 = vperm.slane %v744_v6, %v2390_v63  ;;  %v834_v13 = vsel %vm537_vm9, 0.0, %v833_v54 }
 0x297   : > { %v891_v7 = vrot.slane %v836_v3, 4  ;;  %v742_v14 = vperm.slane %v734_v11, %v2390_v63  ;;  %v885_v16 = vperm.slane %v881_v5, %v2390_v63  ;;  %v754_v18 = vsel %vm537_vm9, %v753_v9, %v738_v0 }
 0x298   : > { %v765_v17 = vrot.slane %v752_v8, 4  ;;  %v886_v19 = vsel %vm537_vm9, %v835_v55, %v824_v46  ;;  %v756_v22 = vsel %vm537_vm9, %v748_v61, %v755_v15  ;;  %v760_v23 = vperm.slane %v754_v18, %v2397_v10 }
 0x299   : > { %v892_v21 = vsel %vm537_vm9, %v891_v7, %v834_v13  ;;  %v767_v24 = vrot.slane %v742_v14, 4  ;;  %v764_v26 = vperm.slane %v756_v22, %v2397_v10  ;;  %v879_v28 = vperm.slane %v875_v4, %v2390_v63 }
 0x29a   : > { %v896_v25 = vperm.slane %v892_v21, %v2390_v63  ;;  %v766_v27 = vsel %vm537_vm9, %v765_v17, %v742_v14  ;;  %v897_v30 = vrot.slane %v885_v16, 4  ;;  %v890_v33 = vperm.slane %v886_v19, %v2390_v63 }
 0x29b   : > { %v768_v31 = vsel %vm537_vm9, %v752_v8, %v767_v24  ;;  %v772_v32 = vperm.slane %v766_v27, %v2397_v10  ;;  %v777_v36 = vrot.slane %v760_v23, 4  ;;  %v779_v37 = vrot.slane %v764_v26, 4 }
 0x29c   : > { %v903_v34 = vrot.slane %v896_v25, 4  ;;  %v776_v35 = vperm.slane %v768_v31, %v2397_v10  ;;  %v898_v40 = vsel %vm537_vm9, %v897_v30, %v879_v28  ;;  %v713_v43 = vrot.slane %v2462_v38, 4 }
 0x29d   : > { %v902_v41 = vperm.slane %v898_v40, %v2397_v10  ;;  %v652_v44 = vsel %vm537_vm9, %v2435_v2, %v2433_v1  ;;  %v780_v45 = vsel %vm537_vm9, 0.0, %v779_v37  ;;  %v781_v46 = vrot.slane %v772_v32, 4 }
 0x29e   : > { %v904_v42 = vsel %vm537_vm9, %v903_v34, %v890_v33  ;;  %v783_v47 = vrot.slane %v776_v35, 4  ;;  %v842_v49 = vrot.slane %v780_v45, 4  ;;  %v662_v54 = vperm.slane %v2479_v53, %v2390_v63 }
 0x29f   : > { %v908_v48 = vperm.slane %v904_v42, %v2397_v10  ;;  %v911_v50 = vrot.slane %v902_v41, 4  ;;  %v663_v55 = vrot.slane %v651_v52, 4  ;;  %v778_v56 = vsel %vm537_vm9, 0.0, %v777_v36 }
 0x2a0   : > { %v784_v57 = vsel %vm537_vm9, 0.0, %v783_v47  ;;  %v837_v1 = vsel %vm537_vm9, %v779_v37, %v760_v23  ;;  %v843_v62 = vsel %vm537_vm9, %v842_v49, %v778_v56  ;;  %v782_v4 = vsel %vm537_vm9, 0.0, %v781_v46 }
 0x2a1   : > { %v909_v59 = vrot.slane %v908_v48, 4  ;;  %v853_v2 = vrot.slane %v784_v57, 4  ;;  %v912_v61 = vsel %vm537_vm9, %v908_v48, %v911_v50  ;;  %v847_v52 = vperm.slane %v843_v62, %v2390_v63 }
 0x2a2   : > { %v916_v0 = vpack.c.bf16 %v912_v61, %v912_v61  ;;  %v848_v5 = vsel %vm537_vm9, %v783_v47, %v772_v32  ;;  %v669_v7 = vrot.slane %v662_v54, 4  ;;  %v841_v9 = vperm.slane %v837_v1, %v2390_v63 }
 0x2a3   : > { %v910_v3 = vsel %vm537_vm9, %v909_v59, %v902_v41  ;;  %v854_v6 = vsel %vm537_vm9, %v853_v2, %v782_v4  ;;  %v859_v13 = vrot.slane %v847_v52, 4  ;;  %v656_v15 = vperm.slane %v652_v44, %v2390_v63 }
 0x2a4   : > { %v915_v53 = vpack.c.bf16 %v910_v3, %v910_v3  ;;  %v1175_v8 = vsel %vm1113_vm10, %v916_v0, 0  ;;  %v858_v11 = vperm.slane %v854_v6, %v2390_v63  ;;  %v852_v16 = vperm.slane %v848_v5, %v2390_v63 }
 0x2a5   : > { %1184 = vmatpush.bf16.xpose.msrb.mxu0 %v1175_v8  ;;  %v860_v17 = vsel %vm537_vm9, %v859_v13, %v841_v9  ;;  %v664_v19 = vsel %vm537_vm9, %v663_v55, %v645_v51  ;;  %v716_v21 = vsel %vm537_vm9, %v2462_v38, %v715_v39  ;;  %v714_v24 = vsel %vm537_vm9, %v713_v43, %v2446_v20 }
 0x2a6   : > { %v1156_v14 = vsel %vm1113_vm10, %v915_v53, 0  ;;  %v865_v18 = vrot.slane %v858_v11, 4  ;;  %v864_v22 = vperm.slane %v860_v17, %v2397_v10  ;;  %v670_v25 = vsel %vm537_vm9, %v669_v7, %v656_v15 }
 0x2a7   : > { %1165 = vmatpush.bf16.xpose.msra.mxu3 %v1156_v14  ;;  %v668_v29 = vperm.slane %v664_v19, %v2397_v10  ;;  %v720_v51 = vpack.c.bf16 %v716_v21, %v716_v21  ;;  %v719_v30 = vpack.c.bf16 %v714_v24, %v714_v24  ;;  %v674_v38 = vperm.slane %v670_v25, %v2397_v10 }
 0x2a8   : > { %v866_v23 = vsel %vm537_vm9, %v865_v18, %v852_v16  ;;  %v873_v27 = vrot.slane %v864_v22, 4 }
 0x2a9   : > { %v870_v26 = vperm.slane %v866_v23, %v2397_v10  ;;  %v677_v32 = vrot.slane %v668_v29, 4  ;;  %v675_v35 = vrot.slane %v674_v38, 4 }
 0x2ab   : > { %v874_v28 = vsel %vm537_vm9, %v870_v26, %v873_v27  ;;  %v871_v31 = vrot.slane %v870_v26, 4  ;;  %v678_v37 = vsel %vm537_vm9, %v674_v38, %v677_v32  ;;  %v676_v40 = vsel %vm537_vm9, %v675_v35, %v668_v29 }
 0x2ac   : > { %2012 = vmatmul.msk.bf16.vlgmr.msrb.gmra.mxu0 %vm1113_vm10, %v720_v51  ;;  %v914_v39 = vpack.c.bf16 %v874_v28, %v874_v28  ;;  %v718_v41 = vpack.c.bf16 %v678_v37, %v678_v37  ;;  %v717_v42 = vpack.c.bf16 %v676_v40, %v676_v40 }
 0x2ad   : > { %v872_v20 = vsel %vm537_vm9, %v871_v31, %v864_v22 }
 0x2ae   : > { %2011 = vmatmul.msk.bf16.vlgmr.msra.gmra.mxu3 %vm1113_vm10, %v719_v30  ;;  %v1137_v33 = vsel %vm1113_vm10, %v914_v39, 0  ;;  %v913_v34 = vpack.c.bf16 %v872_v20, %v872_v20 }
 0x2af   : > { %1146 = vmatpush.bf16.xpose.msra.mxu2 %v1137_v33 }
 0x2b0   : > { %v1118_v36 = vsel %vm1113_vm10, %v913_v34, 0 }
 0x2b1   : > { %1127 = vmatpush.bf16.xpose.msra.mxu1 %v1118_v36 }
 0x2b6   : > { %2010 = vmatmul.msk.bf16.vlgmr.msra.gmra.mxu2 %vm1113_vm10, %v718_v41 }
 0x2b8   : > { %2009 = vmatmul.msk.bf16.vlgmr.msra.gmra.mxu1 %vm1113_vm10, %v717_v42 }
 0x329   : > { %v1186_v43 = vpop.f32.mrf.mxu0 }
 0x32a   : > { %v1200_v44 = vsel %vm1190_vm11, %v1186_v43, -inf }
 0x32b   : > { %1201 = vmax.xlane.f32.xlu2 %v1200_v44 }
 0x331   : > { %v1167_v45 = vpop.f32.mrf.mxu3  ;;  %v1188_v46 = vpop.f32.mrf.mxu0 }
 0x332   : > { %v1197_v47 = vsel %vm1190_vm11, %v1167_v45, -inf }
 0x333   : > { %1198 = vmax.xlane.f32.xlu2 %v1197_v47 }
 0x335   : > { %v1129_v48 = vpop.f32.mrf.mxu1 }
 0x336   : > { %v1191_v49 = vsel %vm1190_vm11, %v1129_v48, -inf }
 0x337   : > { %1192 = vmax.xlane.f32.xlu1 %v1191_v49 }
 0x339   : > { %v1169_v50 = vpop.f32.mrf.mxu3  ;;  %v1148_v54 = vpop.f32.mrf.mxu2 }
 0x33a   : > { %v1194_v55 = vsel %vm1190_vm11, %v1148_v54, -inf }
 0x33b   : > { %1195 = vmax.xlane.f32.xlu0 %v1194_v55 }
 0x33d   : > { %v1131_v56 = vpop.f32.mrf.mxu1 }
 0x341   : > { %v1150_v57 = vpop.f32.mrf.mxu2 }
 0x34b   : > { %2144 = vrot.lane.b32.xlu2 %v2384_v58, %s2259_s24 }
 0x34f   : > { %2149 = vrot.lane.b32.xlu0 %v2387_v60, %s2259_s24 }
 0x39e   : > { %v1202_v59 = vpop.xlane.xlu2 %1201 }
 0x39f   : > { %v1206_v1 = vsub.f32 %v1186_v43, %v1202_v59 }
 0x3a1   : > { %v1213_v2 = vmul.f32 1.442695, %v1206_v1 }
 0x3a3   : > { %2165 = vpow2.f32 %v1213_v2 }
 0x3a6   : > { %v1199_v61 = vpop.xlane.xlu2 %1198 }
 0x3a7   : > { %v1205_v62 = vsub.f32 %v1167_v45, %v1199_v61 }
 0x3a9   : > { %v2566_v0 = vpop.eup %2165  ;;  %v1211_v3 = vmul.f32 1.442695, %v1205_v62 }
 0x3aa   : > { %v1193_v4 = vpop.xlane.xlu1 %1192  ;;  %v1224_v52 = vsel %vm1190_vm11, %v2566_v0, 0.0 }
 0x3ab   : > { %2167 = vpow2.f32 %v1211_v3  ;;  %v1203_v53 = vsub.f32 %v1129_v48, %v1193_v4  ;;  %1225 = vadd.xlane.f32.xlu0 %v1224_v52 }
 0x3ad   : > { %v1207_v5 = vmul.f32 1.442695, %v1203_v53 }
 0x3ae   : > { %v1196_v58 = vpop.xlane.xlu0 %1195  ;;  %v2145_v6 = vpop.permute.xlu2 %2144 }
 0x3af   : > { %v1204_v60 = vsub.f32 %v1148_v54, %v1196_v58  ;;  %v2147_v7 = vunpack.i.h.bf16 %v2145_v6  ;;  %v2146_v8 = vunpack.i.l.bf16 %v2145_v6  ;;  %2169 = vpow2.f32 %v1207_v5 }
 0x3b1   : > { %v2570_v9 = vpop.eup %2167  ;;  %v1209_v11 = vmul.f32 1.442695, %v1204_v60  ;;  %v991_v13 = vrot.slane %v2147_v7, 4  ;;  %v996_v14 = vperm.slane %v2147_v7, %v2390_v63  ;;  %v981_v15 = vrot.slane %v2146_v8, 4 }
 0x3b2   : > { %v986_v16 = vperm.slane %v2146_v8, %v2390_v63  ;;  %v1221_v17 = vsel %vm1190_vm11, %v2570_v9, 0.0 }
 0x3b3   : > { %2171 = vpow2.f32 %v1209_v11  ;;  %v992_v18 = vsel %vm537_vm9, 0.0, %v991_v13  ;;  %v1001_v19 = vrot.slane %v996_v14, 4  ;;  %v982_v21 = vsel %vm537_vm9, 0.0, %v981_v15  ;;  %1222 = vadd.xlane.f32.xlu1 %v1221_v17 }
 0x3b4   : > { %v1000_v22 = vperm.slane %v992_v18, %v2390_v63  ;;  %v990_v23 = vperm.slane %v982_v21, %v2390_v63  ;;  %v1003_v24 = vrot.slane %v986_v16, 4 }
 0x3b5   : > { %v1002_v25 = vsel %vm537_vm9, %v1001_v19, %v986_v16  ;;  %v2581_v26 = vpop.eup %2169 }
 0x3b6   : > { %v1013_v27 = vrot.slane %v1000_v22, 4  ;;  %v1004_v29 = vsel %vm537_vm9, %v996_v14, %v1003_v24  ;;  %v1008_v51 = vperm.slane %v1002_v25, %v2397_v10  ;;  %v1015_v28 = vrot.slane %v990_v23, 4 }
 0x3b7   : > { %v1012_v30 = vperm.slane %v1004_v29, %v2397_v10  ;;  %v1215_v36 = vsel %vm1190_vm11, %v2581_v26, 0.0 }
 0x3b8   : > { %v1014_v31 = vsel %vm537_vm9, %v1013_v27, %v990_v23  ;;  %v1016_v38 = vsel %vm537_vm9, %v1000_v22, %v1015_v28  ;;  %v1025_v33 = vrot.slane %v1008_v51, 4 }
 0x3b9   : > { %v2588_v39 = vpop.eup %2171  ;;  %v1020_v20 = vperm.slane %v1014_v31, %v2397_v10  ;;  %v1024_v32 = vperm.slane %v1016_v38, %v2397_v10  ;;  %v1027_v34 = vrot.slane %v1012_v30, 4 }
 0x3ba   : > { %v1218_v35 = vsel %vm1190_vm11, %v2588_v39, 0.0  ;;  %v1026_v43 = vsel %vm537_vm9, 0.0, %v1025_v33 }
 0x3bb   : > { %v1028_v37 = vsel %vm537_vm9, 0.0, %v1027_v34  ;;  %v1029_v40 = vrot.slane %v1020_v20, 4  ;;  %v1031_v41 = vrot.slane %v1024_v32, 4  ;;  %1219 = vadd.xlane.f32.xlu2 %v1218_v35  ;;  %1216 = vadd.xlane.f32.xlu1 %v1215_v36  ;;  %v1071_v45 = vsel %vm537_vm9, %v1027_v34, %v1008_v51 }
 0x3bc   : > { %v1076_v42 = vrot.slane %v1028_v37, 4  ;;  %v1075_v55 = vperm.slane %v1071_v45, %v2390_v63 }
 0x3bd   : > { %v1032_v44 = vsel %vm537_vm9, 0.0, %v1031_v41  ;;  %v1030_v48 = vsel %vm537_vm9, 0.0, %v1029_v40  ;;  %v1082_v50 = vsel %vm537_vm9, %v1031_v41, %v1020_v20 }
 0x3be   : > { %v1077_v46 = vsel %vm537_vm9, %v1076_v42, %v1026_v43  ;;  %v1087_v47 = vrot.slane %v1032_v44, 4  ;;  %v1086_v61 = vperm.slane %v1082_v50, %v2390_v63 }
 0x3bf   : > { %v1081_v49 = vperm.slane %v1077_v46, %v2390_v63 }
 0x3c0   : > { %v1088_v54 = vsel %vm537_vm9, %v1087_v47, %v1030_v48 }
 0x3c1   : > { %v1093_v56 = vrot.slane %v1081_v49, 4  ;;  %v2150_v57 = vpop.permute.xlu0 %2149  ;;  %v1092_v59 = vperm.slane %v1088_v54, %v2390_v63 }
 0x3c2   : > { %v2152_v1 = vunpack.i.h.bf16 %v2150_v57  ;;  %v2151_v2 = vunpack.i.l.bf16 %v2150_v57 }
 0x3c3   : > { %v1094_v62 = vsel %vm537_vm9, %v1093_v56, %v1075_v55  ;;  %v1099_v3 = vrot.slane %v1092_v59, 4 }
 0x3c4   : > { %v939_v4 = vrot.slane %v2152_v1, 4  ;;  %v944_v52 = vperm.slane %v2152_v1, %v2390_v63  ;;  %v929_v53 = vrot.slane %v2151_v2, 4  ;;  %v934_v5 = vperm.slane %v2151_v2, %v2390_v63 }
 0x3c5   : > { %v1098_v58 = vperm.slane %v1094_v62, %v2397_v10  ;;  %v1100_v6 = vsel %vm537_vm9, %v1099_v3, %v1086_v61 }
 0x3c6   : > { %v940_v60 = vsel %vm537_vm9, 0.0, %v939_v4  ;;  %v949_v7 = vrot.slane %v944_v52, 4  ;;  %v930_v8 = vsel %vm537_vm9, 0.0, %v929_v53  ;;  %v951_v11 = vrot.slane %v934_v5, 4 }
 0x3c7   : > { %v948_v13 = vperm.slane %v940_v60, %v2390_v63  ;;  %v938_v14 = vperm.slane %v930_v8, %v2390_v63  ;;  %v1104_v15 = vperm.slane %v1100_v6, %v2397_v10  ;;  %v1107_v16 = vrot.slane %v1098_v58, 4 }
 0x3c8   : > { %v950_v17 = vsel %vm537_vm9, %v949_v7, %v934_v5  ;;  %v952_v18 = vsel %vm537_vm9, %v944_v52, %v951_v11 }
 0x3c9   : > { %v961_v19 = vrot.slane %v948_v13, 4  ;;  %v956_v21 = vperm.slane %v950_v17, %v2397_v10  ;;  %v960_v22 = vperm.slane %v952_v18, %v2397_v10  ;;  %v963_v23 = vrot.slane %v938_v14, 4 }
 0x3ca   : > { %v1108_v24 = vsel %vm537_vm9, %v1104_v15, %v1107_v16  ;;  %v1105_v25 = vrot.slane %v1104_v15, 4 }
 0x3cb   : > { %v962_v27 = vsel %vm537_vm9, %v961_v19, %v938_v14  ;;  %v964_v29 = vsel %vm537_vm9, %v948_v13, %v963_v23  ;;  %v973_v51 = vrot.slane %v956_v21, 4  ;;  %v975_v28 = vrot.slane %v960_v22, 4 }
 0x3cc   : > { %v968_v30 = vperm.slane %v962_v27, %v2397_v10  ;;  %v972_v31 = vperm.slane %v964_v29, %v2397_v10  ;;  %v1112_v38 = vpack.c.bf16 %v1108_v24, %v1108_v24  ;;  %v1106_v20 = vsel %vm537_vm9, %v1105_v25, %v1098_v58 }
 0x3cd   : > { %v976_v32 = vsel %vm537_vm9, 0.0, %v975_v28  ;;  %v1111_v33 = vpack.c.bf16 %v1106_v20, %v1106_v20  ;;  %v974_v40 = vsel %vm537_vm9, 0.0, %v973_v51  ;;  %v1033_v43 = vsel %vm537_vm9, %v975_v28, %v956_v21 }
 0x3ce   : > { %v977_v34 = vrot.slane %v968_v30, 4  ;;  %v979_v35 = vrot.slane %v972_v31, 4  ;;  %v1038_v36 = vrot.slane %v976_v32, 4  ;;  %v1301_v37 = vsel %vm1242_vm12, %v1112_v38, 0  ;;  %v2082_v38 = vld [vmem:[%s2345_s22 + $0x8] sm:$0xff] }
 0x3cf   : > { %1310 = vmatpush.bf16.msra.mxu0 %v1301_v37  ;;  %v1282_v41 = vsel %vm1242_vm12, %v1111_v33, 0  ;;  %v1037_v48 = vperm.slane %v1033_v43, %v2390_v63 }
 0x3d0   : > { %v980_v42 = vsel %vm537_vm9, 0.0, %v979_v35  ;;  %v1039_v44 = vsel %vm537_vm9, %v1038_v36, %v974_v40  ;;  %1291 = vmatpush.bf16.msrb.mxu3 %v1282_v41  ;;  %v978_v47 = vsel %vm537_vm9, 0.0, %v977_v34  ;;  %v1044_v49 = vsel %vm537_vm9, %v979_v35, %v968_v30 }
 0x3d1   : > { %v1049_v45 = vrot.slane %v980_v42, 4  ;;  %v1043_v46 = vperm.slane %v1039_v44, %v2390_v63  ;;  %v1048_v57 = vperm.slane %v1044_v49, %v2390_v63 }
 0x3d3   : > { %v1050_v50 = vsel %vm537_vm9, %v1049_v45, %v978_v47  ;;  %v1055_v54 = vrot.slane %v1043_v46, 4 }
 0x3d4   : > { %v1054_v55 = vperm.slane %v1050_v50, %v2390_v63 }
 0x3d5   : > { %v1056_v56 = vsel %vm537_vm9, %v1055_v54, %v1037_v48 }
 0x3d6   : > { %v1060_v59 = vperm.slane %v1056_v56, %v2397_v10  ;;  %v1061_v1 = vrot.slane %v1054_v55, 4 }
 0x3d8   : > { %v1062_v2 = vsel %vm537_vm9, %v1061_v1, %v1048_v57  ;;  %v1069_v61 = vrot.slane %v1060_v59, 4 }
 0x3d9   : > { %v1066_v62 = vperm.slane %v1062_v2, %v2397_v10 }
 0x3db   : > { %v1070_v3 = vsel %vm537_vm9, %v1066_v62, %v1069_v61  ;;  %v1067_v4 = vrot.slane %v1066_v62, 4 }
 0x3dc   : > { %v1110_v52 = vpack.c.bf16 %v1070_v3, %v1070_v3 }
 0x3dd   : > { %v1068_v53 = vsel %vm537_vm9, %v1067_v4, %v1060_v59 }
 0x3de   : > { %v1263_v5 = vsel %vm1242_vm12, %v1110_v52, 0  ;;  %v1109_v58 = vpack.c.bf16 %v1068_v53, %v1068_v53 }
 0x3df   : > { %1272 = vmatpush.bf16.msrb.mxu2 %v1263_v5 }
 0x3e0   : > { %v1244_v6 = vsel %vm1242_vm12, %v1109_v58, 0 }
 0x3e1   : > { %1253 = vmatpush.bf16.msrb.mxu1 %v1244_v6 }
 0x3e5   : > { %1532 = vmatpush.bf16.msra.mxu1 %v2082_v38 }
 0x41e   : > { %v1226_v60 = vpop.xlane.xlu0 %1225 }
 0x41f   : > { %2173 = vrcp.f32 %v1226_v60 }
 0x425   : > { %v2174_v7 = vpop.eup %2173 }
 0x426   : > { %v1234_v8 = vmul.f32 %v2174_v7, %v2566_v0  ;;  %v1223_v11 = vpop.xlane.xlu1 %1222 }
 0x427   : > { %2175 = vrcp.f32 %v1223_v11 }
 0x428   : > { %v1238_v13 = vpack.c.bf16 %v1234_v8, %v1234_v8 }
 0x42a   : > { %2016 = vmatmul.msk.bf16.vlgmr.msra.gmra.mxu0 %vm1190_vm11, %v1238_v13 }
 0x42d   : > { %v2176_v14 = vpop.eup %2175 }
 0x42e   : > { %v1233_v15 = vmul.f32 %v2176_v14, %v2570_v9  ;;  %v1220_v16 = vpop.xlane.xlu2 %1219  ;;  %v1217_v17 = vpop.xlane.xlu1 %1216 }
 0x42f   : > { %2177 = vrcp.f32 %v1220_v16 }
 0x430   : > { %2179 = vrcp.f32 %v1217_v17  ;;  %v1237_v18 = vpack.c.bf16 %v1233_v15, %v1233_v15 }
 0x432   : > { %2015 = vmatmul.msk.bf16.vlgmr.msrb.gmra.mxu3 %vm1190_vm11, %v1237_v18 }
 0x435   : > { %v2178_v19 = vpop.eup %2177 }
 0x436   : > { %v2180_v21 = vpop.eup %2179  ;;  %v1232_v22 = vmul.f32 %v2178_v19, %v2588_v39 }
 0x437   : > { %v1231_v0 = vmul.f32 %v2180_v21, %v2581_v26 }
 0x438   : > { %v1236_v23 = vpack.c.bf16 %v1232_v22, %v1232_v22 }
 0x439   : > { %v1235_v24 = vpack.c.bf16 %v1231_v0, %v1231_v0 }
 0x43a   : > { %2014 = vmatmul.msk.bf16.vlgmr.msrb.gmra.mxu2 %vm1190_vm11, %v1236_v23 }
 0x43b   : > { %2013 = vmatmul.msk.bf16.vlgmr.msrb.gmra.mxu1 %vm1190_vm11, %v1235_v24 }
 0x4a7   : > { %v1312_v9 = vpop.f32.mrf.mxu0 }
 0x4a8   : > { %v1378_v25 = vrot.slane %v1312_v9, 4  ;;  %v1383_v51 = vperm.slane %v1312_v9, %v2390_v63 }
 0x4aa   : > { %v1379_v29 = vsel %vm537_vm9, 0.0, %v1378_v25  ;;  %v1388_v39 = vrot.slane %v1383_v51, 4 }
 0x4ab   : > { %v1387_v28 = vperm.slane %v1379_v29, %v2390_v63 }
 0x4ad   : > { %v1400_v35 = vrot.slane %v1387_v28, 4 }
 0x4af   : > { %v1314_v27 = vpop.f32.mrf.mxu0 }
 0x4b5   : > { %v1293_v30 = vpop.f32.mrf.mxu3 }
 0x4b6   : > { %v1368_v31 = vrot.slane %v1293_v30, 4  ;;  %v1373_v26 = vperm.slane %v1293_v30, %v2390_v63 }
 0x4b8   : > { %v1369_v20 = vsel %vm537_vm9, 0.0, %v1368_v31  ;;  %v1389_v32 = vsel %vm537_vm9, %v1388_v39, %v1373_v26  ;;  %v1390_v33 = vrot.slane %v1373_v26, 4  ;;  %v1255_v34 = vpop.f32.mrf.mxu1 }
 0x4b9   : > { %v1377_v36 = vperm.slane %v1369_v20, %v2390_v63  ;;  %v1395_v37 = vperm.slane %v1389_v32, %v2397_v10  ;;  %v1316_v40 = vrot.slane %v1255_v34, 4  ;;  %v1321_v45 = vperm.slane %v1255_v34, %v2390_v63 }
 0x4ba   : > { %v1391_v41 = vsel %vm537_vm9, %v1383_v51, %v1390_v33 }
 0x4bb   : > { %v1399_v42 = vperm.slane %v1391_v41, %v2397_v10  ;;  %v1401_v43 = vsel %vm537_vm9, %v1400_v35, %v1377_v36  ;;  %v1402_v44 = vrot.slane %v1377_v36, 4  ;;  %v1412_v47 = vrot.slane %v1395_v37, 4 }
 0x4bc   : > { %v1407_v46 = vperm.slane %v1401_v43, %v2397_v10  ;;  %v1317_v48 = vsel %vm537_vm9, 0.0, %v1316_v40  ;;  %v1338_v61 = vrot.slane %v1321_v45, 4 }
 0x4bd   : > { %v1403_v49 = vsel %vm537_vm9, %v1387_v28, %v1402_v44  ;;  %v1414_v50 = vrot.slane %v1399_v42, 4  ;;  %v1274_v54 = vpop.f32.mrf.mxu2  ;;  %v1295_v55 = vpop.f32.mrf.mxu3  ;;  %v1325_v57 = vperm.slane %v1317_v48, %v2390_v63  ;;  %v1413_v62 = vsel %vm537_vm9, 0.0, %v1412_v47 }
 0x4be   : > { %v1411_v56 = vperm.slane %v1403_v49, %v2397_v10  ;;  %v1326_v59 = vrot.slane %v1274_v54, 4  ;;  %v1331_v1 = vperm.slane %v1274_v54, %v2390_v63  ;;  %v1416_v3 = vrot.slane %v1407_v46, 4 }
 0x4bf   : > { %v1415_v2 = vsel %vm537_vm9, 0.0, %v1414_v50  ;;  %v1458_v5 = vsel %vm537_vm9, %v1414_v50, %v1395_v37  ;;  %v1350_v11 = vrot.slane %v1325_v57, 4 }
 0x4c0   : > { %v1418_v4 = vrot.slane %v1411_v56, 4  ;;  %v1463_v52 = vrot.slane %v1415_v2, 4  ;;  %v1257_v53 = vpop.f32.mrf.mxu1  ;;  %v1327_v58 = vsel %vm537_vm9, 0.0, %v1326_v59  ;;  %v1336_v6 = vrot.slane %v1331_v1, 4 }
 0x4c1   : > { %v1339_v60 = vsel %vm537_vm9, %v1331_v1, %v1338_v61  ;;  %v1335_v13 = vperm.slane %v1327_v58, %v2390_v63  ;;  %v1417_v18 = vsel %vm537_vm9, 0.0, %v1416_v3  ;;  %v1462_v30 = vperm.slane %v1458_v5, %v2390_v63 }
 0x4c2   : > { %v1419_v7 = vsel %vm537_vm9, 0.0, %v1418_v4  ;;  %v1464_v8 = vsel %vm537_vm9, %v1463_v52, %v1413_v62  ;;  %v1337_v16 = vsel %vm537_vm9, %v1336_v6, %v1321_v45  ;;  %v1347_v17 = vperm.slane %v1339_v60, %v2397_v10  ;;  %v2081_v6 = vld [vmem:[%s2345_s22] sm:$0xff] }
 0x4c3   : > { %v1468_v14 = vperm.slane %v1464_v8, %v2390_v63  ;;  %v1474_v15 = vrot.slane %v1419_v7, 4  ;;  %v1343_v19 = vperm.slane %v1337_v16, %v2397_v10  ;;  %v1348_v21 = vrot.slane %v1335_v13, 4  ;;  %1533 = vmatpush.bf16.msra.mxu1 %v2081_v6  ;;  %v2091_v6 = vld [vmem:[%s2355_s28 + $0x30] sm:$0xff] }
 0x4c4   : > { %v1351_v22 = vsel %vm537_vm9, %v1335_v13, %v1350_v11  ;;  %v1362_v24 = vrot.slane %v1347_v17, 4  ;;  %v1469_v27 = vsel %vm537_vm9, %v1418_v4, %v1407_v46 }
 0x4c5   : > { %v1480_v0 = vrot.slane %v1468_v14, 4  ;;  %v1359_v23 = vperm.slane %v1351_v22, %v2397_v10  ;;  %v1276_v9 = vpop.f32.mrf.mxu2  ;;  %v1475_v25 = vsel %vm537_vm9, %v1474_v15, %v1417_v18  ;;  %v1349_v29 = vsel %vm537_vm9, %v1348_v21, %v1325_v57  ;;  %v2189_v15 = vld [vmem:[#allocation2] sm:$0xff] }
 0x4c6   : > { %v1360_v51 = vrot.slane %v1343_v19, 4  ;;  %v1479_v28 = vperm.slane %v1475_v25, %v2390_v63  ;;  %v1355_v39 = vperm.slane %v1349_v29, %v2397_v10  ;;  %v1363_v31 = vsel %vm537_vm9, 0.0, %v1362_v24 }
 0x4c7   : > { %v1366_v26 = vrot.slane %v1359_v23, 4  ;;  %v1425_v20 = vrot.slane %v1363_v31, 4  ;;  %v1473_v34 = vperm.slane %v1469_v27, %v2390_v63  ;;  %v1481_v35 = vsel %vm537_vm9, %v1480_v0, %v1462_v30 }
 0x4c8   : > { %v1361_v38 = vsel %vm537_vm9, 0.0, %v1360_v51  ;;  %v1364_v32 = vrot.slane %v1355_v39, 4  ;;  %v1420_v36 = vsel %vm537_vm9, %v1362_v24, %v1343_v19  ;;  %v1486_v41 = vrot.slane %v1479_v28, 4  ;;  %v2190_v19 = vld [vmem:[#allocation2 + $0x8] sm:$0xff] }
 0x4c9   : > { %v1367_v33 = vsel %vm537_vm9, 0.0, %v1366_v26  ;;  %v1426_v37 = vsel %vm537_vm9, %v1425_v20, %v1361_v38  ;;  %v1431_v44 = vsel %vm537_vm9, %v1366_v26, %v1355_v39  ;;  %v1485_v46 = vperm.slane %v1481_v35, %v2397_v10  ;;  %v2084_v26 = vld [vmem:[%s2350_s25 + $0x8] sm:$0xff]  ;;  %v2083_v20 = vld [vmem:[%s2350_s25] sm:$0xff] }
 0x4ca   : > { %v1436_v40 = vrot.slane %v1367_v33, 4  ;;  %v1365_v42 = vsel %vm537_vm9, 0.0, %v1364_v32  ;;  %v1430_v43 = vperm.slane %v1426_v37, %v2390_v63  ;;  %v1487_v47 = vsel %vm537_vm9, %v1486_v41, %v1473_v34  ;;  %1621 = vmatpush.bf16.msra.mxu2 %v2084_v26 }
 0x4cb   : > { %v1424_v48 = vperm.slane %v1420_v36, %v2390_v63  ;;  %v1491_v54 = vperm.slane %v1487_v47, %v2397_v10  ;;  %v1435_v55 = vperm.slane %v1431_v44, %v2390_v63  ;;  %v1494_v2 = vrot.slane %v1485_v46, 4 }
 0x4cc   : > { %v1437_v45 = vsel %vm537_vm9, %v1436_v40, %v1365_v42  ;;  %v1442_v49 = vrot.slane %v1430_v43, 4 }
 0x4cd   : > { %v1441_v50 = vperm.slane %v1437_v45, %v2390_v63  ;;  %v1492_v59 = vrot.slane %v1491_v54, 4  ;;  %v1495_v63 = vsel %vm537_vm9, %v1491_v54, %v1494_v2 }
 0x4ce   : > { %v1443_v56 = vsel %vm537_vm9, %v1442_v49, %v1424_v48  ;;  %1622 = vmatpush.bf16.msra.mxu2 %v2083_v20  ;;  %v2750_v49 = vld [vmem:[%s2380_s20] sm:$0x1f]  ;;  %v2087_v20 = vld [vmem:[%s2355_s28 + $0x10] sm:$0xff] }
 0x4cf   : > { %v1448_v57 = vrot.slane %v1441_v50, 4  ;;  %v1447_v1 = vperm.slane %v1443_v56, %v2397_v10  ;;  %v1493_v62 = vsel %vm537_vm9, %v1492_v59, %v1485_v46  ;;  %v1586_v50 = vperm.slane %v2750_v49, 2 }
 0x4d1   : > { %v1449_v61 = vsel %vm537_vm9, %v1448_v57, %v1435_v55  ;;  %v1456_v4 = vrot.slane %v1447_v1, 4  ;;  %v1589_v57 = vperm.slane %v2750_v49, 3 }
 0x4d2   : > { %v1453_v3 = vperm.slane %v1449_v61, %v2397_v10 }
 0x4d4   : > { %v1454_v52 = vrot.slane %v1453_v3, 4  ;;  %v1457_v53 = vsel %vm537_vm9, %v1453_v3, %v1456_v4  ;;  %v2158_v4 = vld [vmem:[%s434_s29] ss:$0 sm:$0xff] }
 0x4d5   : > { %v2153_v5 = vpack.i.bf16 %v1495_v63, %v1457_v53  ;;  %v2092_v63 = vld [vmem:[%s2355_s28 + $0x38] sm:$0xff] }
 0x4d6   : > { %v1455_v58 = vsel %vm537_vm9, %v1454_v52, %v1447_v1  ;;  %1783 = vmatpush.bf16.msra.mxu3 %v2092_v63 }
 0x4d7   : > { %2154 = vrot.lane.b32.xlu1 %v2153_v5, %s2260_s26 }
 0x4da   : > { %1784 = vmatpush.bf16.msra.mxu3 %v2091_v6 }
 0x549   : > { %v2155_v60 = vpop.permute.xlu1 %2154 }
 0x54a   : > { %v2157_v7 = vunpack.i.h.bf16 %v2155_v60  ;;  %v2156_v8 = vunpack.i.l.bf16 %v2155_v60 }
 0x54c   : > { %v1504_v11 = vsel %vm1113_vm10, %v1455_v58, %v2156_v8  ;;  %v1505_v10 = vsel %vm1113_vm10, %v1493_v62, %v2157_v7 }
 0x54d   : > { %v1506_v13 = vpack.c.bf16 %v1505_v10, %v1504_v11 }
 0x54f   : > { %2025 = vmatmul.msk.bf16.vlgmr.msra.gmra.mxu1 %vm436_vm1, %v1506_v13  ;;  %v2090_v13 = vld [vmem:[%s2355_s28 + $0x28] sm:$0xff] }
 0x550   : > { %1785 = vmatpush.bf16.msra.mxu3 %v2090_v13 }
 0x5cc   : > { %v1535_v14 = vpop.f32.mrf.mxu1 }
 0x5cd   : > { %v2727_v16 = vadd.f32 %v2189_v15, %v1535_v14 }
 0x5cf   : > { %v1542_v17 = vsel %vm436_vm1, %v2727_v16, 0.0 }
 0x5d0   : > { %1543 = vadd.xlane.f32.xlu1 %v1542_v17 }
 0x5d4   : > { %v1537_v18 = vpop.f32.mrf.mxu1 }
 0x5d5   : > { %v2731_v21 = vadd.f32 %v2190_v19, %v1537_v18 }
 0x5d7   : > { %v1545_v22 = vsel %vm436_vm1, %v2731_v21, 0.0 }
 0x5d8   : > { %1546 = vadd.xlane.f32.xlu2 %v1545_v22  ;;  %v2089_v22 = vld [vmem:[%s2355_s28 + $0x20] sm:$0xff] }
 0x5d9   : > { %1786 = vmatpush.bf16.msra.mxu3 %v2089_v22 }
 0x643   : > { %v1544_v0 = vpop.xlane.xlu1 %1543 }
 0x644   : > { %v1548_v23 = vmul.f32 %v1544_v0, %v2366_v12 }
 0x646   : > { %v1550_v24 = vsub.f32 %v2727_v16, %v1548_v23 }
 0x648   : > { %v1552_v9 = vmul.f32 %v1550_v24, %v1550_v24 }
 0x64a   : > { %v1554_v25 = vsel %vm436_vm1, %v1552_v9, 0.0 }
 0x64b   : > { %1555 = vadd.xlane.f32.xlu2 %v1554_v25  ;;  %v1547_v27 = vpop.xlane.xlu2 %1546 }
 0x64c   : > { %v1549_v29 = vmul.f32 %v1547_v27, %v2366_v12 }
 0x64e   : > { %v1551_v51 = vsub.f32 %v2731_v21, %v1549_v29  ;;  %v2088_v29 = vld [vmem:[%s2355_s28 + $0x18] sm:$0xff] }
 0x64f   : > { %1787 = vmatpush.bf16.msra.mxu3 %v2088_v29 }
 0x650   : > { %v1553_v28 = vmul.f32 %v1551_v51, %v1551_v51 }
 0x652   : > { %v1557_v30 = vsel %vm436_vm1, %v1553_v28, 0.0 }
 0x653   : > { %1558 = vadd.xlane.f32.xlu0 %v1557_v30  ;;  %1788 = vmatpush.bf16.msra.mxu3 %v2087_v20 }
 0x6be   : > { %v1556_v39 = vpop.xlane.xlu2 %1555 }
 0x6bf   : > { %v1560_v31 = vmul.f32 %v1556_v39, %v2366_v12 }
 0x6c1   : > { %v1562_v38 = vadd.f32 1e-05, %v1560_v31 }
 0x6c3   : > { %2181 = vrsqrt.f32 %v1562_v38  ;;  %vm1570_vm14 = vweird.f32 %v1562_v38 }
 0x6c6   : > { %v1559_v32 = vpop.xlane.xlu0 %1558 }
 0x6c7   : > { %v1561_v33 = vmul.f32 %v1559_v32, %v2366_v12 }
 0x6c9   : > { %v2182_v34 = vpop.eup %2181  ;;  %v1563_v35 = vadd.f32 1e-05, %v1561_v33 }
 0x6ca   : > { %v1565_v36 = vmul.f32 %v2182_v34, %v1562_v38  ;;  %vm1571_vm13 = vweird.f32 %v2182_v34 }
 0x6cb   : > { %2183 = vrsqrt.f32 %v1563_v35  ;;  %vm1572_vm15 = vmor %vm1570_vm14, %vm1571_vm13  ;;  %vm1580_vm2 = vweird.f32 %v1563_v35 }
 0x6cc   : > { %v1566_v37 = vmul.f32 %v2182_v34, %v1565_v36 }
 0x6ce   : > { %v1567_v40 = vmul.f32 0.5, %v1566_v37 }
 0x6d0   : > { %v1568_v41 = vsub.f32 1.5, %v1567_v40  ;;  %v2086_v40 = vld [vmem:[%s2355_s28 + $0x8] sm:$0xff] }
 0x6d1   : > { %v2184_v42 = vpop.eup %2183  ;;  %1789 = vmatpush.bf16.msra.mxu3 %v2086_v40 }
 0x6d2   : > { %v1569_v43 = vmul.f32 %v2182_v34, %v1568_v41  ;;  %v1575_v44 = vmul.f32 %v2184_v42, %v1563_v35  ;;  %vm1581_vm0 = vweird.f32 %v2184_v42 }
 0x6d3   : > { %vm1582_vm3 = vmor %vm1580_vm2, %vm1581_vm0 }
 0x6d4   : > { %v1576_v45 = vmul.f32 %v2184_v42, %v1575_v44  ;;  %v1573_v46 = vsel %vm1572_vm15, %v2182_v34, %v1569_v43 }
 0x6d5   : > { %v1584_v54 = vmul.f32 %v1573_v46, %v1550_v24  ;;  %v2085_v46 = vld [vmem:[%s2355_s28] sm:$0xff] }
 0x6d6   : > { %v1577_v47 = vmul.f32 0.5, %v1576_v45  ;;  %1790 = vmatpush.bf16.msra.mxu3 %v2085_v46 }
 0x6d7   : > { %v1587_v59 = vmul.f32 %v1586_v50, %v1584_v54 }
 0x6d8   : > { %v1578_v48 = vsub.f32 1.5, %v1577_v47 }
 0x6d9   : > { %v1590_v61 = vadd.f32 %v1589_v57, %v1587_v59 }
 0x6da   : > { %v1579_v55 = vmul.f32 %v2184_v42, %v1578_v48 }
 0x6dc   : > { %v1583_v56 = vsel %vm1582_vm3, %v2184_v42, %v1579_v55 }
 0x6dd   : > { %v1585_v1 = vmul.f32 %v1583_v56, %v1551_v51 }
 0x6df   : > { %v1588_v2 = vmul.f32 %v1586_v50, %v1585_v1 }
 0x6e1   : > { %v1591_v62 = vadd.f32 %v1589_v57, %v1588_v2 }
 0x6e3   : > { %v1592_v3 = vpack.c.bf16 %v1591_v62, %v1590_v61 }
 0x6e5   : > { %2034 = vmatmul.msk.bf16.vlgmr.msra.gmra.mxu2 %vm436_vm1, %v1592_v3 }
 0x768   : > { %v1624_v52 = vpop.f32.mrf.mxu2 }
 0x769   : > { %v2760_v53 = vadd.f32 %v2158_v4, %v1624_v52 }
 0x76b   : > { %v2764_v5 = vmul.f32 0.70710677, %v2760_v53 }
 0x76d   : > { %v1633_v58 = vmul.f32 %v2764_v5, %v2764_v5 }
 0x76f   : > { %v1634_v60 = vmin.f32 %v1633_v58, 16.0 }
 0x770   : > { %v1626_v7 = vpop.f32.mrf.mxu2 }
 0x771   : > { %v1635_v8 = vmul.f32 2.1237322e-06, %v1634_v60  ;;  %v1646_v11 = vmul.f32 3.8918573e-05, %v1634_v60  ;;  %v2769_v10 = vadd.f32 %v2158_v4, %v1626_v7 }
 0x773   : > { %v1636_v14 = vadd.f32 0.00028619796, %v1635_v8  ;;  %v1647_v15 = vadd.f32 0.001143296, %v1646_v11  ;;  %v2773_v17 = vmul.f32 0.70710677, %v2769_v10 }
 0x775   : > { %v1648_v18 = vmul.f32 %v1647_v15, %v1634_v60  ;;  %v1673_v19 = vmul.f32 %v2773_v17, %v2773_v17  ;;  %v1637_v0 = vmul.f32 %v1636_v14, %v1634_v60 }
 0x777   : > { %v1649_v23 = vadd.f32 0.014752088, %v1648_v18  ;;  %v1674_v24 = vmin.f32 %v1673_v19, 16.0  ;;  %v1638_v51 = vadd.f32 0.0036580483, %v1637_v0 }
 0x779   : > { %v1650_v9 = vmul.f32 %v1649_v23, %v1634_v60  ;;  %v1675_v25 = vmul.f32 2.1237322e-06, %v1674_v24  ;;  %v1686_v27 = vmul.f32 3.8918573e-05, %v1674_v24  ;;  %v1639_v32 = vmul.f32 %v1638_v51, %v1634_v60 }
 0x77b   : > { %v1651_v28 = vadd.f32 0.112945676, %v1650_v9  ;;  %v1676_v30 = vadd.f32 0.00028619796, %v1675_v25  ;;  %v1687_v39 = vadd.f32 0.001143296, %v1686_v27 }
 0x77c   : > { %v1640_v41 = vadd.f32 0.05243302, %v1639_v32 }
 0x77d   : > { %v1652_v31 = vmul.f32 %v1651_v28, %v1634_v60  ;;  %v1677_v26 = vmul.f32 %v1676_v30, %v1674_v24  ;;  %v1688_v38 = vmul.f32 %v1687_v39, %v1674_v24  ;;  %v1629_v39 = vmul.f32 0.5, %v2760_v53 }
 0x77e   : > { %v1641_v47 = vmul.f32 %v1640_v41, %v1634_v60 }
 0x77f   : > { %v1653_v33 = vadd.f32 0.4994258, %v1652_v31  ;;  %v1678_v34 = vadd.f32 0.0036580483, %v1677_v26  ;;  %v1689_v35 = vadd.f32 0.014752088, %v1688_v38 }
 0x780   : > { %v1642_v56 = vadd.f32 0.18741608, %v1641_v47  ;;  %v1630_v31 = vmul.f32 0.5, %v2769_v10 }
 0x781   : > { %v1654_v36 = vmul.f32 %v1653_v33, %v1634_v60  ;;  %v1690_v37 = vmul.f32 %v1689_v35, %v1674_v24  ;;  %v1679_v43 = vmul.f32 %v1678_v34, %v1674_v24  ;;  %v1734_v33 = vperm.slane %v2750_v49, 4 }
 0x782   : > { %v1643_v61 = vmul.f32 %v1642_v56, %v1634_v60 }
 0x783   : > { %v1655_v42 = vadd.f32 1.0, %v1654_v36  ;;  %v1691_v44 = vadd.f32 0.112945676, %v1690_v37  ;;  %v1680_v48 = vadd.f32 0.05243302, %v1679_v43 }
 0x784   : > { %v1644_v58 = vadd.f32 1.1283791, %v1643_v61 }
 0x785   : > { %2185 = vrcp.f32 %v1655_v42  ;;  %v1692_v45 = vmul.f32 %v1691_v44, %v1674_v24  ;;  %v1681_v59 = vmul.f32 %v1680_v48, %v1674_v24  ;;  %v1667_v3 = vand.u32 2147483648, %v1655_v42 }
 0x786   : > { %v1665_v52 = vand.u32 2147483647, %v1655_v42  ;;  %vm1661_vm5 = vweird.f32 %v1655_v42  ;;  %v1645_v15 = vmul.f32 %v1644_v58, %v2764_v5 }
 0x787   : > { %v1693_v50 = vadd.f32 0.4994258, %v1692_v45  ;;  %v1682_v4 = vadd.f32 0.18741608, %v1681_v59  ;;  %v1668_v8 = vor.u32 1.1754944e-38, %v1667_v3 }
 0x788   : > { %vm1666_vm7 = vcmp.eq.f32.partialorder %v1665_v52, 8.507059e+37 }
 0x789   : > { %v1694_v54 = vmul.f32 %v1693_v50, %v1674_v24  ;;  %v1683_v11 = vmul.f32 %v1682_v4, %v1674_v24 }
 0x78b   : > { %v2186_v55 = vpop.eup %2185  ;;  %v1695_v1 = vadd.f32 1.0, %v1694_v54  ;;  %v1684_v60 = vadd.f32 1.1283791, %v1683_v11 }
 0x78c   : > { %v1657_v57 = vmul.f32 %v2186_v55, %v1655_v42  ;;  %vm1662_vm4 = vweird.f32 %v2186_v55 }
 0x78d   : > { %2187 = vrcp.f32 %v1695_v1  ;;  %vm1663_vm6 = vmor %vm1661_vm5, %vm1662_vm4  ;;  %v1707_v19 = vand.u32 2147483648, %v1695_v1  ;;  %v1705_v23 = vand.u32 2147483647, %v1695_v1  ;;  %vm1701_vm9 = vweird.f32 %v1695_v1 }
 0x78e   : > { %v1658_v2 = vsub.f32 1.0, %v1657_v57  ;;  %v1685_v29 = vmul.f32 %v1684_v60, %v2773_v17 }
 0x78f   : > { %v1708_v25 = vor.u32 1.1754944e-38, %v1707_v19  ;;  %vm1706_vm11 = vcmp.eq.f32.partialorder %v1705_v23, 8.507059e+37 }
 0x790   : > { %v1659_v62 = vmul.f32 %v2186_v55, %v1658_v2 }
 0x792   : > { %v1660_v63 = vadd.f32 %v2186_v55, %v1659_v62 }
 0x793   : > { %v2188_v6 = vpop.eup %2187 }
 0x794   : > { %v1664_v7 = vsel %vm1663_vm6, %v2186_v55, %v1660_v63  ;;  %v1697_v13 = vmul.f32 %v2188_v6, %v1695_v1  ;;  %vm1702_vm8 = vweird.f32 %v2188_v6 }
 0x795   : > { %v1669_v14 = vsel %vm1666_vm7, %v1668_v8, %v1664_v7  ;;  %vm1703_vm10 = vmor %vm1701_vm9, %vm1702_vm8 }
 0x796   : > { %v1698_v18 = vsub.f32 1.0, %v1697_v13  ;;  %v1670_v22 = vmul.f32 %v1669_v14, %v1645_v15 }
 0x798   : > { %v1699_v0 = vmul.f32 %v2188_v6, %v1698_v18  ;;  %v2035_v27 = vclamps-f32 %v1670_v22, 1.0 }
 0x79a   : > { %v1700_v9 = vadd.f32 %v2188_v6, %v1699_v0  ;;  %v1713_v30 = vadd.f32 1.0, %v2035_v27 }
 0x79c   : > { %v1704_v24 = vsel %vm1703_vm10, %v2188_v6, %v1700_v9  ;;  %v1715_v38 = vmul.f32 %v1713_v30, %v1629_v39 }
 0x79d   : > { %v1709_v51 = vsel %vm1706_vm11, %v1708_v25, %v1704_v24 }
 0x79e   : > { %v1710_v28 = vmul.f32 %v1709_v51, %v1685_v29 }
 0x7a0   : > { %v2036_v5 = vclamps-f32 %v1710_v28, 1.0 }
 0x7a2   : > { %v1714_v26 = vadd.f32 1.0, %v2036_v5 }
 0x7a4   : > { %v1716_v20 = vmul.f32 %v1714_v26, %v1630_v31 }
 0x7a6   : > { %v1717_v32 = vpack.c.bf16 %v1716_v20, %v1715_v38 }
 0x7a8   : > { %1791 = vmatmul.bf16.vlgmr.msra.gmra.mxu3 %v1717_v32 }
 0x82b   : > { %v1792_v34 = vpop.f32.mrf.mxu3 }
 0x82c   : > { %v1793_v35 = vadd.f32 %v1792_v34, %v1734_v33 }
 0x82e   : > { %v1797_v17 = vadd.f32 %v1793_v35, %v2727_v16 }
 0x832   : > { %1802 = sbr.rel (%p2069_p6) target bundleno = 2105 (0x839), region = 64 }
 0x833   : > { %v1794_v36 = vpop.f32.mrf.mxu3 }
 0x834   : > { %v1795_v37 = vadd.f32 %v1794_v36, %v1734_v33 }
 0x836   : > { %v1798_v40 = vadd.f32 %v1795_v37, %v2731_v21 }
 0x837   : > { %1803 = vst.msk [vmem:[#allocation2] sm:$0xff] %vm436_vm1, %v1797_v17 }
 0x838   : > { %1804 = vst.msk [vmem:[#allocation2 + $0x8] sm:$0xff] %vm436_vm1, %v1798_v40 }
 0x839 PF: > { %p2070_p7 = scmp.ne.s32.totalorder %s2244_s30, 1 }
 0x83b   : > { %1808 = sbr.rel (%p2070_p7) target bundleno = 2389 (0x955), region = 68 }
 0x840   : > { %v1811_v49 = vsel %vm436_vm1, %v1797_v17, 0.0  ;;  %v1814_v16 = vsel %vm436_vm1, %v1798_v40, 0.0  ;;  %v2192_v63 = vld [vmem:[%s2830_s7] ss:$0 sm:$0xff] }
 0x841   : > { %1812 = vadd.xlane.f32.xlu0 %v1811_v49  ;;  %v2193_v7 = vld [vmem:[%s2831_s8] ss:$0 sm:$0xff] }
 0x849   : > { %1815 = vadd.xlane.f32.xlu0 %v1814_v16 }
 0x8b4   : > { %v1813_v53 = vpop.xlane.xlu0 %1812 }
 0x8b5   : > { %v1817_v21 = vmul.f32 %v1813_v53, %v2366_v12 }
 0x8b7   : > { %v1819_v10 = vsub.f32 %v1797_v17, %v1817_v21 }
 0x8b9   : > { %v1821_v41 = vmul.f32 %v1819_v10, %v1819_v10 }
 0x8bb   : > { %v1823_v42 = vsel %vm436_vm1, %v1821_v41, 0.0 }
 0x8bc   : > { %1824 = vadd.xlane.f32.xlu1 %v1823_v42  ;;  %v1816_v43 = vpop.xlane.xlu0 %1815 }
 0x8bd   : > { %v1818_v44 = vmul.f32 %v1816_v43, %v2366_v12 }
 0x8bf   : > { %v1820_v45 = vsub.f32 %v1798_v40, %v1818_v44 }
 0x8c1   : > { %v1822_v46 = vmul.f32 %v1820_v45, %v1820_v45 }
 0x8c3   : > { %v1826_v47 = vsel %vm436_vm1, %v1822_v46, 0.0 }
 0x8c4   : > { %1827 = vadd.xlane.f32.xlu1 %v1826_v47 }
 0x92f   : > { %v1825_v48 = vpop.xlane.xlu1 %1824 }
 0x930   : > { %v1829_v50 = vmul.f32 %v1825_v48, %v2366_v12 }
 0x932   : > { %v1831_v54 = vadd.f32 1e-05, %v1829_v50 }
 0x934   : > { %2194 = vrsqrt.f32 %v1831_v54  ;;  %vm1839_vm13 = vweird.f32 %v1831_v54 }
 0x937   : > { %v1828_v55 = vpop.xlane.xlu1 %1827 }
 0x938   : > { %v1830_v56 = vmul.f32 %v1828_v55, %v2366_v12 }
 0x93a   : > { %v2195_v57 = vpop.eup %2194  ;;  %v1832_v59 = vadd.f32 1e-05, %v1830_v56 }
 0x93b   : > { %v1834_v1 = vmul.f32 %v2195_v57, %v1831_v54  ;;  %vm1840_vm12 = vweird.f32 %v2195_v57 }
 0x93c   : > { %2196 = vrsqrt.f32 %v1832_v59  ;;  %vm1841_vm14 = vmor %vm1839_vm13, %vm1840_vm12  ;;  %vm1849_vm0 = vweird.f32 %v1832_v59 }
 0x93d   : > { %v1835_v2 = vmul.f32 %v2195_v57, %v1834_v1 }
 0x93f   : > { %v1836_v61 = vmul.f32 0.5, %v1835_v2 }
 0x941   : > { %v1837_v62 = vsub.f32 1.5, %v1836_v61 }
 0x942   : > { %v2197_v3 = vpop.eup %2196 }
 0x943   : > { %v1838_v4 = vmul.f32 %v2195_v57, %v1837_v62  ;;  %v1844_v52 = vmul.f32 %v2197_v3, %v1832_v59  ;;  %vm1850_vm15 = vweird.f32 %v2197_v3 }
 0x944   : > { %vm1851_vm2 = vmor %vm1849_vm0, %vm1850_vm15 }
 0x945   : > { %v1842_v58 = vsel %vm1841_vm14, %v2195_v57, %v1838_v4  ;;  %v1845_v6 = vmul.f32 %v2197_v3, %v1844_v52 }
 0x946   : > { %v1853_v12 = vmul.f32 %v1842_v58, %v1819_v10 }
 0x947   : > { %v1846_v8 = vmul.f32 0.5, %v1845_v6 }
 0x948   : > { %v1858_v11 = vmul.f32 %v2192_v63, %v1853_v12 }
 0x949   : > { %v1847_v13 = vsub.f32 1.5, %v1846_v8 }
 0x94a   : > { %v1863_v14 = vadd.f32 %v2193_v7, %v1858_v11 }
 0x94b   : > { %v1848_v15 = vmul.f32 %v2197_v3, %v1847_v13 }
 0x94c   : > { %1865 = vst.msk [vmem:[#allocation2] sm:$0xff] %vm436_vm1, %v1863_v14 }
 0x94d   : > { %v1852_v18 = vsel %vm1851_vm2, %v2197_v3, %v1848_v15 }
 0x94e   : > { %v1854_v60 = vmul.f32 %v1852_v18, %v1820_v45 }
 0x950   : > { %v1859_v19 = vmul.f32 %v2192_v63, %v1854_v60 }
 0x952   : > { %v1864_v22 = vadd.f32 %v2193_v7, %v1859_v19 }
 0x954   : > { %1866 = vst.msk [vmem:[#allocation2 + $0x8] sm:$0xff] %vm436_vm1, %v1864_v22 }
 0x955 PF: > { %p2097_p8 = scmp.eq.s32.totalorder %s1985_s12, 1  ;;  %s1877_s19 = sshll.u32 %s2832_s9, 4  ;;  %s1878_s19 = int_to_ptr.hbm [resolvable:$true] %s1877_s19 }
 0x956   : > { %s2261_s20 = smov [#allocation2]   ;;  %s2262_s23 = smov 128  }
 0x957   : > { %s1875_s21 = sshll.u32 %s2261_s20, 4  ;;  %s2263_s24 = smov 8   ;;  %s1876_s21 = int_to_ptr.vmem [resolvable:$true] %s1875_s21 }
 0x958   : > { %2094 = dma.vmem_to_hbm [thread:$0]  (%p2097_p8), %s1876_s21, 256, %s1878_s19, [#allocation3], %s2262_s23, %s2262_s23, %s2263_s24  }
 0x959   : > { %2239 = dma.done.wait (%p2097_p8), [#allocation3], 256  }
 0x95a   : > { %2241 = vsyncadd (%p2097_p8), [#allocation3], 4294967040 }
 0x95b PF: > { %s20_s11 = sadd.s32 1, %s2252_s11   ;;  %s2833_s30 = smov %s2248_s10 }
 0x95c   : > { %p17_p9 = scmp.ge.s32.totalorder %s20_s11, 4   ;;  %s2834_s10 = smov %s2836_s13 }
 0x95e   :  { %19 = sbr.rel (!%p17_p9) target bundleno = 2 (0x2), region = 110 }
 0x963   :  { %1894 = vsyncpa [#allocation3], 1 }
 0x964   :  { %1896 = vsyncpa [#allocation3 + $0x1], 1 }

</bundles_post_ra>
